<compile_context>
chip_gen: v5e
topology: v5e:2x2
jax: 0.10.0
libtpu: 0.0.40
codegen_flags: <defaults>
</compile_context>

<pallas_src>
import functools

import jax
import jax.numpy as jnp
import numpy as np
from jax import lax
from jax.experimental import pallas as pl
from jax.experimental.pallas import tpu as pltpu

EPS = 1e-5
LANE = 128


def _round_up(x, m):
    return (x + m - 1) // m * m


def _tile_bytes(shape, dtype):
    """Physical VMEM bytes of one buffer after (sublane, 128)-lane tiling."""
    item = jnp.dtype(dtype).itemsize
    if len(shape) < 2:
        shape = (1,) * (2 - len(shape)) + tuple(shape)
    sub_tile = 8 * max(1, 4 // item)          # 8 rows f32, 16 rows bf16
    lead = int(np.prod(shape[:-2])) if len(shape) > 2 else 1
    return lead * _round_up(shape[-2], sub_tile) * _round_up(shape[-1], LANE) * item


def _vmem_limit(io_bytes, scratch_bytes):
    # double-buffered pipelined blocks + persistent scratch, 2x headroom.
    est = 2 * sum(io_bytes) + sum(scratch_bytes)
    return int(min(max(2 * est + (2 << 20), 8 << 20), 64 << 20))


# --------------------------- Pallas kernels ---------------------------------

def _conv3x3_stats_kernel(x_ref, w_ref, scale_ref, shift_ref, bias_ref,
                          y_ref, stats_ref, pad_ref, col_ref,
                          *, apply_bn_relu: bool):
    # Per grid step (one image):
    #   x_ref    : (1, Ho, Wo, Cin)   bf16 activation (raw for conv1, pre-BN for conv2)
    #   w_ref    : (Kp, Coutp)        bf16 packed im2col weights (Kp = rnd128(9*Cin))
    #   scale/shift_ref : (1, Cin)    folded BN of the *previous* layer
    #   bias_ref : (1, Cout)          conv bias (real channels)
    #   y_ref    : (1, Ho, Wo, Cout)  pre-BN conv output, bf16, real channels only
    #   stats_ref: (1, 2, Cout)       [sum, sumsq] over this image's pixels
    #   pad_ref  : (Ho+2, Wo+2, Cin)  f32 scratch, zero-padded activation
    #   col_ref  : (Ho, Wo, Kp)       f32 scratch, packed im2col block
    _, Ho, Wo, cin = x_ref.shape
    cout = y_ref.shape[-1]
    coutp = w_ref.shape[-1]
    kp = col_ref.shape[-1]
    R = Ho * Wo

    # One-time scratch init: border of pad_ref and K-padding columns of col_ref
    # stay zero for the whole grid; everything else is rewritten every step.
    # (Grid axis is "arbitrary" => sequential, so step 0 really runs first.)
    @pl.when(pl.program_id(0) == 0)
    def _init():
        pad_ref[...] = jnp.zeros_like(pad_ref)
        col_ref[...] = jnp.zeros_like(col_ref)

    act = x_ref[0].astype(jnp.float32)                     # (Ho, Wo, cin)
    if apply_bn_relu:
        # folded BatchNorm (scale/shift) + ReLU of the previous layer
        act = jnp.maximum(act * scale_ref[...] + shift_ref[...], 0.0)

    # interior of the zero-padded buffer (pad=1); border already zero
    pad_ref[1:1 + Ho, 1:1 + Wo, :] = act

    # Packed im2col: K = 9*cin real columns (one lane-offset masked store per
    # tap, no per-tap 128-channel padding, no value reshapes).
    for t in range(9):
        ky, kx = divmod(t, 3)
        col_ref[:, :, t * cin:(t + 1) * cin] = pad_ref[ky:ky + Ho, kx:kx + Wo, :]

    # Single MXU matmul with K = Kp (layout-identity reshape, bf16 inputs,
    # f32 accumulation).  pad_ref is kept f32: after packing it is ~KBs, and
    # f32 keeps the unaligned-sublane interior store on the simple path.
    col = col_ref[...].reshape(R, kp).astype(jnp.bfloat16)
    y = jnp.dot(col, w_ref[...], preferred_element_type=jnp.float32)   # (R, coutp)

    # back to spatial (layout-identity), drop weight-padding lanes, add bias
    y = y.reshape(Ho, Wo, coutp)[:, :, :cout] + bias_ref[...]          # (Ho, Wo, cout)

    y_ref[0] = y.astype(y_ref.dtype)

    # partial BatchNorm statistics of the pre-BN conv output (two plain row
    # stores, no concatenate).  NOTE: stats are taken from the f32 value while
    # the stored y is bf16-rounded -- a <=0.2% systematic mismatch, well inside
    # the test tolerance.  TODO(synk): switch to per-block-centered accumulation
    # if N*Ho*Wo grows large enough for E[x^2]-E[x]^2 to lose precision.
    s = jnp.sum(jnp.sum(y, axis=0), axis=0, keepdims=True)             # (1, cout)
    ss = jnp.sum(jnp.sum(y * y, axis=0), axis=0, keepdims=True)        # (1, cout)
    stats_ref[0, 0:1, :] = s
    stats_ref[0, 1:2, :] = ss


def _bn_relu_kernel(y_ref, scale_ref, shift_ref, o_ref):
    # Final folded BN + ReLU; bf16 output over real channels only.
    o_ref[0] = jnp.maximum(
        y_ref[0].astype(jnp.float32) * scale_ref[...] + shift_ref[...], 0.0
    ).astype(o_ref.dtype)


# --------------------------- wrappers ----------------------------------------

def _conv_stage(x, w_flat, scale, shift, bias, *, apply_bn_relu,
                out_dtype=jnp.bfloat16):
    # x: (N, Ho, Wo, Cin) bf16 ; w_flat: (Kp, Coutp) bf16 ;
    # scale/shift: (1, Cin) f32 ; bias: (1, Cout) f32
    N, Ho, Wo, Cin = x.shape
    Kp, Coutp = w_flat.shape
    Cout = bias.shape[-1]

    kernel = functools.partial(_conv3x3_stats_kernel,
                               apply_bn_relu=apply_bn_relu)

    io_bytes = [
        _tile_bytes((1, Ho, Wo, Cin), x.dtype),
        _tile_bytes((Kp, Coutp), w_flat.dtype),
        _tile_bytes((1, Cin), jnp.float32) * 2,
        _tile_bytes((1, Cout), jnp.float32),
        _tile_bytes((1, Ho, Wo, Cout), out_dtype),
        _tile_bytes((1, 2, Cout), jnp.float32),
    ]
    scratch_bytes = [
        _tile_bytes((Ho + 2, Wo + 2, Cin), jnp.float32),
        _tile_bytes((Ho, Wo, Kp), jnp.float32),
    ]

    y, stats = pl.pallas_call(
        kernel,
        out_shape=(jax.ShapeDtypeStruct((N, Ho, Wo, Cout), out_dtype),
                   jax.ShapeDtypeStruct((N, 2, Cout), jnp.float32)),
        grid=(N,),
        in_specs=[
            pl.BlockSpec((1, Ho, Wo, Cin), lambda n: (n, 0, 0, 0)),
            pl.BlockSpec((Kp, Coutp), lambda n: (0, 0)),
            pl.BlockSpec((1, Cin), lambda n: (0, 0)),
            pl.BlockSpec((1, Cin), lambda n: (0, 0)),
            pl.BlockSpec((1, Cout), lambda n: (0, 0)),
        ],
        out_specs=(
            pl.BlockSpec((1, Ho, Wo, Cout), lambda n: (n, 0, 0, 0)),
            pl.BlockSpec((1, 2, Cout), lambda n: (n, 0, 0)),
        ),
        scratch_shapes=[
            pltpu.VMEM((Ho + 2, Wo + 2, Cin), jnp.float32),   # zero-padded act
            pltpu.VMEM((Ho, Wo, Kp), jnp.float32),            # packed im2col
        ],
        compiler_params=pltpu.CompilerParams(
            # "arbitrary" (sequential) so the pid==0 scratch init is sound;
            # measured perf delta vs "parallel" on a batch axis is ~0.
            dimension_semantics=("arbitrary",),
            vmem_limit_bytes=_vmem_limit(io_bytes, scratch_bytes)),
    )(x, w_flat, scale, shift, bias)
    return y, stats


def _bn_relu_apply(y, scale, shift):
    N, Ho, Wo, C = y.shape
    io_bytes = [_tile_bytes((1, Ho, Wo, C), y.dtype) * 2,
                _tile_bytes((1, C), jnp.float32) * 2]
    return pl.pallas_call(
        _bn_relu_kernel,
        out_shape=jax.ShapeDtypeStruct((N, Ho, Wo, C), jnp.bfloat16),
        grid=(N,),
        in_specs=[
            pl.BlockSpec((1, Ho, Wo, C), lambda n: (n, 0, 0, 0)),
            pl.BlockSpec((1, C), lambda n: (0, 0)),
            pl.BlockSpec((1, C), lambda n: (0, 0)),
        ],
        out_specs=pl.BlockSpec((1, Ho, Wo, C), lambda n: (n, 0, 0, 0)),
        compiler_params=pltpu.CompilerParams(
            dimension_semantics=("parallel",),     # no persistent scratch here
            vmem_limit_bytes=_vmem_limit(io_bytes, [])),
    )(y, scale, shift)


def _finalize_bn(stats, gamma, beta, count):
    # Combine per-image partial sums into folded BN scale/shift (tiny XLA ops).
    s = jnp.sum(stats[:, 0, :], axis=0)
    ss = jnp.sum(stats[:, 1, :], axis=0)
    mean = s / count
    var = jnp.maximum(ss / count - mean * mean, 0.0)     # biased (training) var
    scale = gamma * lax.rsqrt(var + EPS)
    shift = beta - mean * scale
    return scale[None, :].astype(jnp.float32), shift[None, :].astype(jnp.float32)


def _prep_weight(w):
    # (3, 3, Cin, Cout) -> packed (9*Cin, Cout), zero-padded to MXU-friendly
    # (round128(9*Cin), round128(Cout)), bf16.  Only the weights are padded;
    # activations keep their real channel count everywhere.
    kh, kw, cin, cout = w.shape
    k = kh * kw * cin
    kp, coutp = _round_up(k, LANE), _round_up(cout, LANE)
    wf = w.reshape(k, cout)
    wf = jnp.pad(wf, ((0, kp - k), (0, coutp - cout)))
    return wf.astype(jnp.bfloat16)


def down_forward(x_nchw, params):
    N, Cin, H, W = x_nchw.shape
    Cout = params["w1"].shape[-1]
    Ho, Wo = H // 2, W // 2
    count = jnp.float32(N * Ho * Wo)

    # 2x2/stride-2 max-pool: one fused XLA reduce_window, then NHWC + bf16
    # (real channels only -- no 32x padded-channel HBM inflation any more).
    xp = lax.reduce_window(x_nchw, -jnp.inf, lax.max,
                           (1, 1, 2, 2), (1, 1, 2, 2), "VALID")
    x = jnp.transpose(xp, (0, 2, 3, 1)).astype(jnp.bfloat16)     # (N, Ho, Wo, Cin)

    w1 = _prep_weight(params["w1"])
    w2 = _prep_weight(params["w2"])
    b1 = params["b1"][None, :].astype(jnp.float32)
    b2 = params["b2"][None, :].astype(jnp.float32)

    ones = jnp.ones((1, Cin), jnp.float32)
    zeros = jnp.zeros((1, Cin), jnp.float32)

    # conv1 (pre-BN, bf16) + per-image batch statistics
    y1, st1 = _conv_stage(x, w1, ones, zeros, b1, apply_bn_relu=False)
    sc1, sh1 = _finalize_bn(st1, params["g1"], params["beta1"], count)

    # BN1+ReLU fused into conv2's prologue; conv2 pre-BN output + statistics
    y2, st2 = _conv_stage(y1, w2, sc1, sh1, b2, apply_bn_relu=True)
    sc2, sh2 = _finalize_bn(st2, params["g2"], params["beta2"], count)

    # final BN2 + ReLU (bf16, real channels only)
    out = _bn_relu_apply(y2, sc2, sh2)                   # (N, Ho, Wo, Cout)

    # back to NCHW, public dtype f32 (matches the nn.Module)
    return jnp.transpose(out, (0, 3, 1, 2)).astype(jnp.float32)


# --------------------------- pure-JAX reference -------------------------------

def _ref_down(x_nchw, params):
    x = lax.reduce_window(x_nchw, -jnp.inf, lax.max,
                          (1, 1, 2, 2), (1, 1, 2, 2), "VALID")

    def cbr(x, w, b, g, be):
        y = lax.conv_general_dilated(
            x, jnp.transpose(w, (3, 2, 0, 1)), (1, 1), "SAME",
            dimension_numbers=("NCHW", "OIHW", "NCHW"))
        y = y + b[None, :, None, None]
        mean = jnp.mean(y, axis=(0, 2, 3), keepdims=True)
        var = jnp.mean((y - mean) ** 2, axis=(0, 2, 3), keepdims=True)
        y = (y - mean) * lax.rsqrt(var + EPS)
        y = y * g[None, :, None, None] + be[None, :, None, None]
        return jnp.maximum(y, 0.0)

    x = cbr(x, params["w1"], params["b1"], params["g1"], params["beta1"])
    x = cbr(x, params["w2"], params["b2"], params["g2"], params["beta2"])
    return x


# --------------------------- main ---------------------------------------------

if __name__ == "__main__":
    key = jax.random.PRNGKey(0)
    kx, k1, k2, k3, k4, k5, k6 = jax.random.split(key, 7)

    N, Cin, H, W = 2, 4, 16, 16
    Cout = 8
    x = jax.random.normal(kx, (N, Cin, H, W), jnp.float32)

    params = dict(
        w1=jax.random.normal(k1, (3, 3, Cin, Cout), jnp.float32) / np.sqrt(9 * Cin),
        b1=0.1 * jax.random.normal(k2, (Cout,), jnp.float32),
        g1=jnp.ones((Cout,), jnp.float32),
        beta1=jnp.zeros((Cout,), jnp.float32),
        w2=jax.random.normal(k3, (3, 3, Cout, Cout), jnp.float32) / np.sqrt(9 * Cout),
        b2=0.1 * jax.random.normal(k4, (Cout,), jnp.float32),
        g2=jnp.ones((Cout,), jnp.float32) + 0.1 * jax.random.normal(k5, (Cout,), jnp.float32),
        beta2=0.1 * jax.random.normal(k6, (Cout,), jnp.float32),
    )

    out = jax.jit(down_forward)(x, params)
    out = jax.block_until_ready(out)
    assert out.shape == (N, Cout, H // 2, W // 2)

    ref = _ref_down(x, params)
    # bf16 matmul inputs / bf16 intermediates / bf16 final store vs. a pure-f32
    # reference -> tolerance sized for end-to-end bf16 rounding (~1% rel).
    np.testing.assert_allclose(np.asarray(out), np.asarray(ref), rtol=5e-2, atol=5e-2)

    print("KERNEL_OK")
</pallas_src>

<mosaic_0001>
module attributes {stable_mosaic.version = 11 : i64} {
  func.func @_conv3x3_stats_kernel(%arg0: i32, %arg1: memref<1x8x8x4xbf16, #tpu.memory_space<vmem>>, %arg2: memref<128x128xbf16, #tpu.memory_space<vmem>>, %arg3: memref<1x4xf32, #tpu.memory_space<vmem>>, %arg4: memref<1x4xf32, #tpu.memory_space<vmem>>, %arg5: memref<1x8xf32, #tpu.memory_space<vmem>>, %arg6: memref<1x8x8x8xbf16, #tpu.memory_space<vmem>>, %arg7: memref<1x2x8xf32, #tpu.memory_space<vmem>>, %arg8: memref<10x10x4xf32, #tpu.memory_space<vmem>>, %arg9: memref<8x8x128xf32, #tpu.memory_space<vmem>>) attributes {dimension_semantics = [#tpu.dimension_semantics<arbitrary>], iteration_bounds = array<i64: 2>, scalar_prefetch = 0 : i64, scratch_operands = 2 : i64, tpu.core_type = #tpu.core_type<tc>, window_params = [{transform_indices = @transform_0, window_bounds = array<i64: 1, 8, 8, 4>}, {pipeline_mode = #tpu.pipeline_mode<synchronous>, transform_indices = @transform_1, window_bounds = array<i64: 128, 128>}, {pipeline_mode = #tpu.pipeline_mode<synchronous>, transform_indices = @transform_2, window_bounds = array<i64: 1, 4>}, {pipeline_mode = #tpu.pipeline_mode<synchronous>, transform_indices = @transform_3, window_bounds = array<i64: 1, 4>}, {pipeline_mode = #tpu.pipeline_mode<synchronous>, transform_indices = @transform_4, window_bounds = array<i64: 1, 8>}, {transform_indices = @transform_5, window_bounds = array<i64: 1, 8, 8, 8>}, {transform_indices = @transform_6, window_bounds = array<i64: 1, 2, 8>}]} {
    %c0_i32 = arith.constant 0 : i32
    %0 = arith.cmpi eq, %arg0, %c0_i32 : i32
    %1 = arith.extui %0 : i1 to i32
    %c0_i32_0 = arith.constant 0 : i32
    %2 = arith.cmpi ne, %1, %c0_i32_0 : i32
    scf.if %2 {
      %cst_72 = arith.constant 0.000000e+00 : f32
      %53 = vector.broadcast %cst_72 : f32 to vector<10x10x4xf32>
      %c0_73 = arith.constant 0 : index
      %c0_74 = arith.constant 0 : index
      %c0_75 = arith.constant 0 : index
      %54 = vector.load %arg8[%c0_73, %c0_74, %c0_75] : memref<10x10x4xf32, #tpu.memory_space<vmem>>, vector<10x10x4xf32>
      tpu.vector_store %arg8[%c0_73, %c0_74, %c0_75], %53 {strides = array<i32>} : memref<10x10x4xf32, #tpu.memory_space<vmem>>, vector<10x10x4xf32>,
      %cst_76 = arith.constant 0.000000e+00 : f32
      %55 = vector.broadcast %cst_76 : f32 to vector<8x8x128xf32>
      %c0_77 = arith.constant 0 : index
      %c0_78 = arith.constant 0 : index
      %c0_79 = arith.constant 0 : index
      %56 = vector.load %arg9[%c0_77, %c0_78, %c0_79] : memref<8x8x128xf32, #tpu.memory_space<vmem>>, vector<8x8x128xf32>
      tpu.vector_store %arg9[%c0_77, %c0_78, %c0_79], %55 {strides = array<i32>} : memref<8x8x128xf32, #tpu.memory_space<vmem>>, vector<8x8x128xf32>,
    } else {
    }
    %c0 = arith.constant 0 : index
    %c0_1 = arith.constant 0 : index
    %c0_2 = arith.constant 0 : index
    %c0_3 = arith.constant 0 : index
    %3 = vector.load %arg1[%c0, %c0_1, %c0_2, %c0_3] : memref<1x8x8x4xbf16, #tpu.memory_space<vmem>>, vector<1x8x8x4xbf16>
    %4 = vector.shape_cast %3 : vector<1x8x8x4xbf16> to vector<8x8x4xbf16>
    %5 = arith.extf %4 : vector<8x8x4xbf16> to vector<8x8x4xf32>
    %c1 = arith.constant 1 : index
    %c1_4 = arith.constant 1 : index
    %c0_5 = arith.constant 0 : index
    %6 = vector.load %arg8[%c1, %c1_4, %c0_5] : memref<10x10x4xf32, #tpu.memory_space<vmem>>, vector<8x8x4xf32>
    tpu.vector_store %arg8[%c1, %c1_4, %c0_5], %5 {strides = array<i32>} : memref<10x10x4xf32, #tpu.memory_space<vmem>>, vector<8x8x4xf32>,
    %c0_6 = arith.constant 0 : index
    %c0_7 = arith.constant 0 : index
    %c0_8 = arith.constant 0 : index
    %7 = vector.load %arg8[%c0_6, %c0_7, %c0_8] : memref<10x10x4xf32, #tpu.memory_space<vmem>>, vector<8x8x4xf32>
    %c0_9 = arith.constant 0 : index
    %c0_10 = arith.constant 0 : index
    %c0_11 = arith.constant 0 : index
    %8 = vector.load %arg9[%c0_9, %c0_10, %c0_11] : memref<8x8x128xf32, #tpu.memory_space<vmem>>, vector<8x8x4xf32>
    tpu.vector_store %arg9[%c0_9, %c0_10, %c0_11], %7 {strides = array<i32>} : memref<8x8x128xf32, #tpu.memory_space<vmem>>, vector<8x8x4xf32>,
    %c0_12 = arith.constant 0 : index
    %c1_13 = arith.constant 1 : index
    %c0_14 = arith.constant 0 : index
    %9 = vector.load %arg8[%c0_12, %c1_13, %c0_14] : memref<10x10x4xf32, #tpu.memory_space<vmem>>, vector<8x8x4xf32>
    %c0_15 = arith.constant 0 : index
    %c0_16 = arith.constant 0 : index
    %c4 = arith.constant 4 : index
    %10 = vector.load %arg9[%c0_15, %c0_16, %c4] : memref<8x8x128xf32, #tpu.memory_space<vmem>>, vector<8x8x4xf32>
    tpu.vector_store %arg9[%c0_15, %c0_16, %c4], %9 {strides = array<i32>} : memref<8x8x128xf32, #tpu.memory_space<vmem>>, vector<8x8x4xf32>,
    %c0_17 = arith.constant 0 : index
    %c2 = arith.constant 2 : index
    %c0_18 = arith.constant 0 : index
    %11 = vector.load %arg8[%c0_17, %c2, %c0_18] : memref<10x10x4xf32, #tpu.memory_space<vmem>>, vector<8x8x4xf32>
    %c0_19 = arith.constant 0 : index
    %c0_20 = arith.constant 0 : index
    %c8 = arith.constant 8 : index
    %12 = vector.load %arg9[%c0_19, %c0_20, %c8] : memref<8x8x128xf32, #tpu.memory_space<vmem>>, vector<8x8x4xf32>
    tpu.vector_store %arg9[%c0_19, %c0_20, %c8], %11 {strides = array<i32>} : memref<8x8x128xf32, #tpu.memory_space<vmem>>, vector<8x8x4xf32>,
    %c1_21 = arith.constant 1 : index
    %c0_22 = arith.constant 0 : index
    %c0_23 = arith.constant 0 : index
    %13 = vector.load %arg8[%c1_21, %c0_22, %c0_23] : memref<10x10x4xf32, #tpu.memory_space<vmem>>, vector<8x8x4xf32>
    %c0_24 = arith.constant 0 : index
    %c0_25 = arith.constant 0 : index
    %c12 = arith.constant 12 : index
    %14 = vector.load %arg9[%c0_24, %c0_25, %c12] : memref<8x8x128xf32, #tpu.memory_space<vmem>>, vector<8x8x4xf32>
    tpu.vector_store %arg9[%c0_24, %c0_25, %c12], %13 {strides = array<i32>} : memref<8x8x128xf32, #tpu.memory_space<vmem>>, vector<8x8x4xf32>,
    %c1_26 = arith.constant 1 : index
    %c1_27 = arith.constant 1 : index
    %c0_28 = arith.constant 0 : index
    %15 = vector.load %arg8[%c1_26, %c1_27, %c0_28] : memref<10x10x4xf32, #tpu.memory_space<vmem>>, vector<8x8x4xf32>
    %c0_29 = arith.constant 0 : index
    %c0_30 = arith.constant 0 : index
    %c16 = arith.constant 16 : index
    %16 = vector.load %arg9[%c0_29, %c0_30, %c16] : memref<8x8x128xf32, #tpu.memory_space<vmem>>, vector<8x8x4xf32>
    tpu.vector_store %arg9[%c0_29, %c0_30, %c16], %15 {strides = array<i32>} : memref<8x8x128xf32, #tpu.memory_space<vmem>>, vector<8x8x4xf32>,
    %c1_31 = arith.constant 1 : index
    %c2_32 = arith.constant 2 : index
    %c0_33 = arith.constant 0 : index
    %17 = vector.load %arg8[%c1_31, %c2_32, %c0_33] : memref<10x10x4xf32, #tpu.memory_space<vmem>>, vector<8x8x4xf32>
    %c0_34 = arith.constant 0 : index
    %c0_35 = arith.constant 0 : index
    %c20 = arith.constant 20 : index
    %18 = vector.load %arg9[%c0_34, %c0_35, %c20] : memref<8x8x128xf32, #tpu.memory_space<vmem>>, vector<8x8x4xf32>
    tpu.vector_store %arg9[%c0_34, %c0_35, %c20], %17 {strides = array<i32>} : memref<8x8x128xf32, #tpu.memory_space<vmem>>, vector<8x8x4xf32>,
    %c2_36 = arith.constant 2 : index
    %c0_37 = arith.constant 0 : index
    %c0_38 = arith.constant 0 : index
    %19 = vector.load %arg8[%c2_36, %c0_37, %c0_38] : memref<10x10x4xf32, #tpu.memory_space<vmem>>, vector<8x8x4xf32>
    %c0_39 = arith.constant 0 : index
    %c0_40 = arith.constant 0 : index
    %c24 = arith.constant 24 : index
    %20 = vector.load %arg9[%c0_39, %c0_40, %c24] : memref<8x8x128xf32, #tpu.memory_space<vmem>>, vector<8x8x4xf32>
    tpu.vector_store %arg9[%c0_39, %c0_40, %c24], %19 {strides = array<i32>} : memref<8x8x128xf32, #tpu.memory_space<vmem>>, vector<8x8x4xf32>,
    %c2_41 = arith.constant 2 : index
    %c1_42 = arith.constant 1 : index
    %c0_43 = arith.constant 0 : index
    %21 = vector.load %arg8[%c2_41, %c1_42, %c0_43] : memref<10x10x4xf32, #tpu.memory_space<vmem>>, vector<8x8x4xf32>
    %c0_44 = arith.constant 0 : index
    %c0_45 = arith.constant 0 : index
    %c28 = arith.constant 28 : index
    %22 = vector.load %arg9[%c0_44, %c0_45, %c28] : memref<8x8x128xf32, #tpu.memory_space<vmem>>, vector<8x8x4xf32>
    tpu.vector_store %arg9[%c0_44, %c0_45, %c28], %21 {strides = array<i32>} : memref<8x8x128xf32, #tpu.memory_space<vmem>>, vector<8x8x4xf32>,
    %c2_46 = arith.constant 2 : index
    %c2_47 = arith.constant 2 : index
    %c0_48 = arith.constant 0 : index
    %23 = vector.load %arg8[%c2_46, %c2_47, %c0_48] : memref<10x10x4xf32, #tpu.memory_space<vmem>>, vector<8x8x4xf32>
    %c0_49 = arith.constant 0 : index
    %c0_50 = arith.constant 0 : index
    %c32 = arith.constant 32 : index
    %24 = vector.load %arg9[%c0_49, %c0_50, %c32] : memref<8x8x128xf32, #tpu.memory_space<vmem>>, vector<8x8x4xf32>
    tpu.vector_store %arg9[%c0_49, %c0_50, %c32], %23 {strides = array<i32>} : memref<8x8x128xf32, #tpu.memory_space<vmem>>, vector<8x8x4xf32>,
    %c0_51 = arith.constant 0 : index
    %c0_52 = arith.constant 0 : index
    %c0_53 = arith.constant 0 : index
    %25 = vector.load %arg9[%c0_51, %c0_52, %c0_53] : memref<8x8x128xf32, #tpu.memory_space<vmem>>, vector<8x8x128xf32>
    %26 = vector.shape_cast %25 : vector<8x8x128xf32> to vector<64x128xf32>
    %27 = arith.truncf %26 : vector<64x128xf32> to vector<64x128xbf16>
    %c0_54 = arith.constant 0 : index
    %c0_55 = arith.constant 0 : index
    %28 = vector.load %arg2[%c0_54, %c0_55] : memref<128x128xbf16, #tpu.memory_space<vmem>>, vector<128x128xbf16>
    %cst = arith.constant dense<0.000000e+00> : vector<64x128xf32>
    %29 = tpu.matmul %27, %28, %cst {dimension_numbers = #tpu.dot_dimension_numbers<[1], [0], [0], [1], [0, 0, 1, 1], [], []>} : vector<64x128xbf16>, vector<128x128xbf16>, vector<64x128xf32> -> vector<64x128xf32>
    %30 = vector.shape_cast %29 : vector<64x128xf32> to vector<8x8x128xf32>
    %31 = vector.extract_strided_slice %30 {offsets = [0, 0, 0], sizes = [8, 8, 8], strides = [1, 1, 1]} : vector<8x8x128xf32> to vector<8x8x8xf32>
    %c0_56 = arith.constant 0 : index
    %c0_57 = arith.constant 0 : index
    %32 = vector.load %arg5[%c0_56, %c0_57] : memref<1x8xf32, #tpu.memory_space<vmem>>, vector<1x8xf32>
    %33 = vector.shape_cast %32 : vector<1x8xf32> to vector<1x1x8xf32>
    %34 = vector.broadcast %33 : vector<1x1x8xf32> to vector<8x8x8xf32>
    %35 = arith.addf %31, %34 : vector<8x8x8xf32>
    %36 = arith.truncf %35 : vector<8x8x8xf32> to vector<8x8x8xbf16>
    %c0_58 = arith.constant 0 : index
    %c0_59 = arith.constant 0 : index
    %c0_60 = arith.constant 0 : index
    %c0_61 = arith.constant 0 : index
    %37 = vector.load %arg6[%c0_58, %c0_59, %c0_60, %c0_61] : memref<1x8x8x8xbf16, #tpu.memory_space<vmem>>, vector<1x8x8x8xbf16>
    %38 = vector.shape_cast %37 : vector<1x8x8x8xbf16> to vector<8x8x8xbf16>
    %39 = vector.shape_cast %36 : vector<8x8x8xbf16> to vector<1x8x8x8xbf16>
    tpu.vector_store %arg6[%c0_58, %c0_59, %c0_60, %c0_61], %39 {strides = array<i32>} : memref<1x8x8x8xbf16, #tpu.memory_space<vmem>>, vector<1x8x8x8xbf16>,
    %cst_62 = arith.constant dense<0.000000e+00> : vector<8x8xf32>
    %40 = vector.multi_reduction <add>, %35, %cst_62 [0] : vector<8x8x8xf32> to vector<8x8xf32>
    %cst_63 = arith.constant dense<0.000000e+00> : vector<8xf32>
    %41 = vector.multi_reduction <add>, %40, %cst_63 [0] : vector<8x8xf32> to vector<8xf32>
    %42 = vector.shape_cast %41 : vector<8xf32> to vector<1x8xf32>
    %43 = arith.mulf %35, %35 : vector<8x8x8xf32>
    %cst_64 = arith.constant dense<0.000000e+00> : vector<8x8xf32>
    %44 = vector.multi_reduction <add>, %43, %cst_64 [0] : vector<8x8x8xf32> to vector<8x8xf32>
    %cst_65 = arith.constant dense<0.000000e+00> : vector<8xf32>
    %45 = vector.multi_reduction <add>, %44, %cst_65 [0] : vector<8x8xf32> to vector<8xf32>
    %46 = vector.shape_cast %45 : vector<8xf32> to vector<1x8xf32>
    %c0_66 = arith.constant 0 : index
    %c0_67 = arith.constant 0 : index
    %c0_68 = arith.constant 0 : index
    %47 = vector.load %arg7[%c0_66, %c0_67, %c0_68] : memref<1x2x8xf32, #tpu.memory_space<vmem>>, vector<1x1x8xf32>
    %48 = vector.shape_cast %47 : vector<1x1x8xf32> to vector<1x8xf32>
    %49 = vector.shape_cast %42 : vector<1x8xf32> to vector<1x1x8xf32>
    tpu.vector_store %arg7[%c0_66, %c0_67, %c0_68], %49 {strides = array<i32>} : memref<1x2x8xf32, #tpu.memory_space<vmem>>, vector<1x1x8xf32>,
    %c0_69 = arith.constant 0 : index
    %c1_70 = arith.constant 1 : index
    %c0_71 = arith.constant 0 : index
    %50 = vector.load %arg7[%c0_69, %c1_70, %c0_71] : memref<1x2x8xf32, #tpu.memory_space<vmem>>, vector<1x1x8xf32>
    %51 = vector.shape_cast %50 : vector<1x1x8xf32> to vector<1x8xf32>
    %52 = vector.shape_cast %46 : vector<1x8xf32> to vector<1x1x8xf32>
    tpu.vector_store %arg7[%c0_69, %c1_70, %c0_71], %52 {strides = array<i32>} : memref<1x2x8xf32, #tpu.memory_space<vmem>>, vector<1x1x8xf32>,
    return
  }
  func.func @transform_0(%arg0: i32) -> (i32, i32, i32, i32) {
    %c0_i32 = arith.constant 0 : i32
    %c0_i32_0 = arith.constant 0 : i32
    %c0_i32_1 = arith.constant 0 : i32
    %c0_i32_2 = arith.constant 0 : i32
    return %arg0, %c0_i32, %c0_i32_0, %c0_i32_1 : i32, i32, i32, i32
  }
  func.func @transform_1(%arg0: i32) -> (i32, i32) {
    %c0_i32 = arith.constant 0 : i32
    %c0_i32_0 = arith.constant 0 : i32
    %c0_i32_1 = arith.constant 0 : i32
    return %c0_i32, %c0_i32_0 : i32, i32
  }
  func.func @transform_2(%arg0: i32) -> (i32, i32) {
    %c0_i32 = arith.constant 0 : i32
    %c0_i32_0 = arith.constant 0 : i32
    %c0_i32_1 = arith.constant 0 : i32
    return %c0_i32, %c0_i32_0 : i32, i32
  }
  func.func @transform_3(%arg0: i32) -> (i32, i32) {
    %c0_i32 = arith.constant 0 : i32
    %c0_i32_0 = arith.constant 0 : i32
    %c0_i32_1 = arith.constant 0 : i32
    return %c0_i32, %c0_i32_0 : i32, i32
  }
  func.func @transform_4(%arg0: i32) -> (i32, i32) {
    %c0_i32 = arith.constant 0 : i32
    %c0_i32_0 = arith.constant 0 : i32
    %c0_i32_1 = arith.constant 0 : i32
    return %c0_i32, %c0_i32_0 : i32, i32
  }
  func.func @transform_5(%arg0: i32) -> (i32, i32, i32, i32) {
    %c0_i32 = arith.constant 0 : i32
    %c0_i32_0 = arith.constant 0 : i32
    %c0_i32_1 = arith.constant 0 : i32
    %c0_i32_2 = arith.constant 0 : i32
    return %arg0, %c0_i32, %c0_i32_0, %c0_i32_1 : i32, i32, i32, i32
  }
  func.func @transform_6(%arg0: i32) -> (i32, i32, i32) {
    %c0_i32 = arith.constant 0 : i32
    %c0_i32_0 = arith.constant 0 : i32
    %c0_i32_1 = arith.constant 0 : i32
    return %arg0, %c0_i32, %c0_i32_0 : i32, i32, i32
  }
}

module attributes {stable_mosaic.version = 11 : i64} {
  func.func @_bn_relu_kernel(%arg0: i32, %arg1: memref<1x8x8x8xbf16, #tpu.memory_space<vmem>>, %arg2: memref<1x8xf32, #tpu.memory_space<vmem>>, %arg3: memref<1x8xf32, #tpu.memory_space<vmem>>, %arg4: memref<1x8x8x8xbf16, #tpu.memory_space<vmem>>) attributes {dimension_semantics = [#tpu.dimension_semantics<parallel>], iteration_bounds = array<i64: 2>, scalar_prefetch = 0 : i64, scratch_operands = 0 : i64, tpu.core_type = #tpu.core_type<tc>, window_params = [{transform_indices = @transform_0, window_bounds = array<i64: 1, 8, 8, 8>}, {pipeline_mode = #tpu.pipeline_mode<synchronous>, transform_indices = @transform_1, window_bounds = array<i64: 1, 8>}, {pipeline_mode = #tpu.pipeline_mode<synchronous>, transform_indices = @transform_2, window_bounds = array<i64: 1, 8>}, {transform_indices = @transform_3, window_bounds = array<i64: 1, 8, 8, 8>}]} {
    %c0 = arith.constant 0 : index
    %c0_0 = arith.constant 0 : index
    %c0_1 = arith.constant 0 : index
    %c0_2 = arith.constant 0 : index
    %0 = vector.load %arg1[%c0, %c0_0, %c0_1, %c0_2] : memref<1x8x8x8xbf16, #tpu.memory_space<vmem>>, vector<1x8x8x8xbf16>
    %1 = vector.shape_cast %0 : vector<1x8x8x8xbf16> to vector<8x8x8xbf16>
    %2 = arith.extf %1 : vector<8x8x8xbf16> to vector<8x8x8xf32>
    %c0_3 = arith.constant 0 : index
    %c0_4 = arith.constant 0 : index
    %3 = vector.load %arg2[%c0_3, %c0_4] : memref<1x8xf32, #tpu.memory_space<vmem>>, vector<1x8xf32>
    %4 = vector.shape_cast %3 : vector<1x8xf32> to vector<1x1x8xf32>
    %5 = vector.broadcast %4 : vector<1x1x8xf32> to vector<8x8x8xf32>
    %6 = arith.mulf %2, %5 : vector<8x8x8xf32>
    %c0_5 = arith.constant 0 : index
    %c0_6 = arith.constant 0 : index
    %7 = vector.load %arg3[%c0_5, %c0_6] : memref<1x8xf32, #tpu.memory_space<vmem>>, vector<1x8xf32>
    %8 = vector.shape_cast %7 : vector<1x8xf32> to vector<1x1x8xf32>
    %9 = vector.broadcast %8 : vector<1x1x8xf32> to vector<8x8x8xf32>
    %10 = arith.addf %6, %9 : vector<8x8x8xf32>
    %cst = arith.constant 0.000000e+00 : f32
    %11 = vector.broadcast %cst : f32 to vector<8x8x8xf32>
    %12 = arith.maximumf %10, %11 : vector<8x8x8xf32>
    %13 = arith.truncf %12 : vector<8x8x8xf32> to vector<8x8x8xbf16>
    %c0_7 = arith.constant 0 : index
    %c0_8 = arith.constant 0 : index
    %c0_9 = arith.constant 0 : index
    %c0_10 = arith.constant 0 : index
    %14 = vector.load %arg4[%c0_7, %c0_8, %c0_9, %c0_10] : memref<1x8x8x8xbf16, #tpu.memory_space<vmem>>, vector<1x8x8x8xbf16>
    %15 = vector.shape_cast %14 : vector<1x8x8x8xbf16> to vector<8x8x8xbf16>
    %16 = vector.shape_cast %13 : vector<8x8x8xbf16> to vector<1x8x8x8xbf16>
    tpu.vector_store %arg4[%c0_7, %c0_8, %c0_9, %c0_10], %16 {strides = array<i32>} : memref<1x8x8x8xbf16, #tpu.memory_space<vmem>>, vector<1x8x8x8xbf16>,
    return
  }
  func.func @transform_0(%arg0: i32) -> (i32, i32, i32, i32) {
    %c0_i32 = arith.constant 0 : i32
    %c0_i32_0 = arith.constant 0 : i32
    %c0_i32_1 = arith.constant 0 : i32
    %c0_i32_2 = arith.constant 0 : i32
    return %arg0, %c0_i32, %c0_i32_0, %c0_i32_1 : i32, i32, i32, i32
  }
  func.func @transform_1(%arg0: i32) -> (i32, i32) {
    %c0_i32 = arith.constant 0 : i32
    %c0_i32_0 = arith.constant 0 : i32
    %c0_i32_1 = arith.constant 0 : i32
    return %c0_i32, %c0_i32_0 : i32, i32
  }
  func.func @transform_2(%arg0: i32) -> (i32, i32) {
    %c0_i32 = arith.constant 0 : i32
    %c0_i32_0 = arith.constant 0 : i32
    %c0_i32_1 = arith.constant 0 : i32
    return %c0_i32, %c0_i32_0 : i32, i32
  }
  func.func @transform_3(%arg0: i32) -> (i32, i32, i32, i32) {
    %c0_i32 = arith.constant 0 : i32
    %c0_i32_0 = arith.constant 0 : i32
    %c0_i32_1 = arith.constant 0 : i32
    %c0_i32_2 = arith.constant 0 : i32
    return %arg0, %c0_i32, %c0_i32_0, %c0_i32_1 : i32, i32, i32, i32
  }
}

module attributes {stable_mosaic.version = 11 : i64} {
  func.func @_conv3x3_stats_kernel(%arg0: i32, %arg1: memref<1x8x8x8xbf16, #tpu.memory_space<vmem>>, %arg2: memref<128x128xbf16, #tpu.memory_space<vmem>>, %arg3: memref<1x8xf32, #tpu.memory_space<vmem>>, %arg4: memref<1x8xf32, #tpu.memory_space<vmem>>, %arg5: memref<1x8xf32, #tpu.memory_space<vmem>>, %arg6: memref<1x8x8x8xbf16, #tpu.memory_space<vmem>>, %arg7: memref<1x2x8xf32, #tpu.memory_space<vmem>>, %arg8: memref<10x10x8xf32, #tpu.memory_space<vmem>>, %arg9: memref<8x8x128xf32, #tpu.memory_space<vmem>>) attributes {dimension_semantics = [#tpu.dimension_semantics<arbitrary>], iteration_bounds = array<i64: 2>, scalar_prefetch = 0 : i64, scratch_operands = 2 : i64, tpu.core_type = #tpu.core_type<tc>, window_params = [{transform_indices = @transform_0, window_bounds = array<i64: 1, 8, 8, 8>}, {pipeline_mode = #tpu.pipeline_mode<synchronous>, transform_indices = @transform_1, window_bounds = array<i64: 128, 128>}, {pipeline_mode = #tpu.pipeline_mode<synchronous>, transform_indices = @transform_2, window_bounds = array<i64: 1, 8>}, {pipeline_mode = #tpu.pipeline_mode<synchronous>, transform_indices = @transform_3, window_bounds = array<i64: 1, 8>}, {pipeline_mode = #tpu.pipeline_mode<synchronous>, transform_indices = @transform_4, window_bounds = array<i64: 1, 8>}, {transform_indices = @transform_5, window_bounds = array<i64: 1, 8, 8, 8>}, {transform_indices = @transform_6, window_bounds = array<i64: 1, 2, 8>}]} {
    %c0_i32 = arith.constant 0 : i32
    %0 = arith.cmpi eq, %arg0, %c0_i32 : i32
    %1 = arith.extui %0 : i1 to i32
    %c0_i32_0 = arith.constant 0 : i32
    %2 = arith.cmpi ne, %1, %c0_i32_0 : i32
    scf.if %2 {
      %cst_77 = arith.constant 0.000000e+00 : f32
      %63 = vector.broadcast %cst_77 : f32 to vector<10x10x8xf32>
      %c0_78 = arith.constant 0 : index
      %c0_79 = arith.constant 0 : index
      %c0_80 = arith.constant 0 : index
      %64 = vector.load %arg8[%c0_78, %c0_79, %c0_80] : memref<10x10x8xf32, #tpu.memory_space<vmem>>, vector<10x10x8xf32>
      tpu.vector_store %arg8[%c0_78, %c0_79, %c0_80], %63 {strides = array<i32>} : memref<10x10x8xf32, #tpu.memory_space<vmem>>, vector<10x10x8xf32>,
      %cst_81 = arith.constant 0.000000e+00 : f32
      %65 = vector.broadcast %cst_81 : f32 to vector<8x8x128xf32>
      %c0_82 = arith.constant 0 : index
      %c0_83 = arith.constant 0 : index
      %c0_84 = arith.constant 0 : index
      %66 = vector.load %arg9[%c0_82, %c0_83, %c0_84] : memref<8x8x128xf32, #tpu.memory_space<vmem>>, vector<8x8x128xf32>
      tpu.vector_store %arg9[%c0_82, %c0_83, %c0_84], %65 {strides = array<i32>} : memref<8x8x128xf32, #tpu.memory_space<vmem>>, vector<8x8x128xf32>,
    } else {
    }
    %c0 = arith.constant 0 : index
    %c0_1 = arith.constant 0 : index
    %c0_2 = arith.constant 0 : index
    %c0_3 = arith.constant 0 : index
    %3 = vector.load %arg1[%c0, %c0_1, %c0_2, %c0_3] : memref<1x8x8x8xbf16, #tpu.memory_space<vmem>>, vector<1x8x8x8xbf16>
    %4 = vector.shape_cast %3 : vector<1x8x8x8xbf16> to vector<8x8x8xbf16>
    %5 = arith.extf %4 : vector<8x8x8xbf16> to vector<8x8x8xf32>
    %c0_4 = arith.constant 0 : index
    %c0_5 = arith.constant 0 : index
    %6 = vector.load %arg3[%c0_4, %c0_5] : memref<1x8xf32, #tpu.memory_space<vmem>>, vector<1x8xf32>
    %7 = vector.shape_cast %6 : vector<1x8xf32> to vector<1x1x8xf32>
    %8 = vector.broadcast %7 : vector<1x1x8xf32> to vector<8x8x8xf32>
    %9 = arith.mulf %5, %8 : vector<8x8x8xf32>
    %c0_6 = arith.constant 0 : index
    %c0_7 = arith.constant 0 : index
    %10 = vector.load %arg4[%c0_6, %c0_7] : memref<1x8xf32, #tpu.memory_space<vmem>>, vector<1x8xf32>
    %11 = vector.shape_cast %10 : vector<1x8xf32> to vector<1x1x8xf32>
    %12 = vector.broadcast %11 : vector<1x1x8xf32> to vector<8x8x8xf32>
    %13 = arith.addf %9, %12 : vector<8x8x8xf32>
    %cst = arith.constant 0.000000e+00 : f32
    %14 = vector.broadcast %cst : f32 to vector<8x8x8xf32>
    %15 = arith.maximumf %13, %14 : vector<8x8x8xf32>
    %c1 = arith.constant 1 : index
    %c1_8 = arith.constant 1 : index
    %c0_9 = arith.constant 0 : index
    %16 = vector.load %arg8[%c1, %c1_8, %c0_9] : memref<10x10x8xf32, #tpu.memory_space<vmem>>, vector<8x8x8xf32>
    tpu.vector_store %arg8[%c1, %c1_8, %c0_9], %15 {strides = array<i32>} : memref<10x10x8xf32, #tpu.memory_space<vmem>>, vector<8x8x8xf32>,
    %c0_10 = arith.constant 0 : index
    %c0_11 = arith.constant 0 : index
    %c0_12 = arith.constant 0 : index
    %17 = vector.load %arg8[%c0_10, %c0_11, %c0_12] : memref<10x10x8xf32, #tpu.memory_space<vmem>>, vector<8x8x8xf32>
    %c0_13 = arith.constant 0 : index
    %c0_14 = arith.constant 0 : index
    %c0_15 = arith.constant 0 : index
    %18 = vector.load %arg9[%c0_13, %c0_14, %c0_15] : memref<8x8x128xf32, #tpu.memory_space<vmem>>, vector<8x8x8xf32>
    tpu.vector_store %arg9[%c0_13, %c0_14, %c0_15], %17 {strides = array<i32>} : memref<8x8x128xf32, #tpu.memory_space<vmem>>, vector<8x8x8xf32>,
    %c0_16 = arith.constant 0 : index
    %c1_17 = arith.constant 1 : index
    %c0_18 = arith.constant 0 : index
    %19 = vector.load %arg8[%c0_16, %c1_17, %c0_18] : memref<10x10x8xf32, #tpu.memory_space<vmem>>, vector<8x8x8xf32>
    %c0_19 = arith.constant 0 : index
    %c0_20 = arith.constant 0 : index
    %c8 = arith.constant 8 : index
    %20 = vector.load %arg9[%c0_19, %c0_20, %c8] : memref<8x8x128xf32, #tpu.memory_space<vmem>>, vector<8x8x8xf32>
    tpu.vector_store %arg9[%c0_19, %c0_20, %c8], %19 {strides = array<i32>} : memref<8x8x128xf32, #tpu.memory_space<vmem>>, vector<8x8x8xf32>,
    %c0_21 = arith.constant 0 : index
    %c2 = arith.constant 2 : index
    %c0_22 = arith.constant 0 : index
    %21 = vector.load %arg8[%c0_21, %c2, %c0_22] : memref<10x10x8xf32, #tpu.memory_space<vmem>>, vector<8x8x8xf32>
    %c0_23 = arith.constant 0 : index
    %c0_24 = arith.constant 0 : index
    %c16 = arith.constant 16 : index
    %22 = vector.load %arg9[%c0_23, %c0_24, %c16] : memref<8x8x128xf32, #tpu.memory_space<vmem>>, vector<8x8x8xf32>
    tpu.vector_store %arg9[%c0_23, %c0_24, %c16], %21 {strides = array<i32>} : memref<8x8x128xf32, #tpu.memory_space<vmem>>, vector<8x8x8xf32>,
    %c1_25 = arith.constant 1 : index
    %c0_26 = arith.constant 0 : index
    %c0_27 = arith.constant 0 : index
    %23 = vector.load %arg8[%c1_25, %c0_26, %c0_27] : memref<10x10x8xf32, #tpu.memory_space<vmem>>, vector<8x8x8xf32>
    %c0_28 = arith.constant 0 : index
    %c0_29 = arith.constant 0 : index
    %c24 = arith.constant 24 : index
    %24 = vector.load %arg9[%c0_28, %c0_29, %c24] : memref<8x8x128xf32, #tpu.memory_space<vmem>>, vector<8x8x8xf32>
    tpu.vector_store %arg9[%c0_28, %c0_29, %c24], %23 {strides = array<i32>} : memref<8x8x128xf32, #tpu.memory_space<vmem>>, vector<8x8x8xf32>,
    %c1_30 = arith.constant 1 : index
    %c1_31 = arith.constant 1 : index
    %c0_32 = arith.constant 0 : index
    %25 = vector.load %arg8[%c1_30, %c1_31, %c0_32] : memref<10x10x8xf32, #tpu.memory_space<vmem>>, vector<8x8x8xf32>
    %c0_33 = arith.constant 0 : index
    %c0_34 = arith.constant 0 : index
    %c32 = arith.constant 32 : index
    %26 = vector.load %arg9[%c0_33, %c0_34, %c32] : memref<8x8x128xf32, #tpu.memory_space<vmem>>, vector<8x8x8xf32>
    tpu.vector_store %arg9[%c0_33, %c0_34, %c32], %25 {strides = array<i32>} : memref<8x8x128xf32, #tpu.memory_space<vmem>>, vector<8x8x8xf32>,
    %c1_35 = arith.constant 1 : index
    %c2_36 = arith.constant 2 : index
    %c0_37 = arith.constant 0 : index
    %27 = vector.load %arg8[%c1_35, %c2_36, %c0_37] : memref<10x10x8xf32, #tpu.memory_space<vmem>>, vector<8x8x8xf32>
    %c0_38 = arith.constant 0 : index
    %c0_39 = arith.constant 0 : index
    %c40 = arith.constant 40 : index
    %28 = vector.load %arg9[%c0_38, %c0_39, %c40] : memref<8x8x128xf32, #tpu.memory_space<vmem>>, vector<8x8x8xf32>
    tpu.vector_store %arg9[%c0_38, %c0_39, %c40], %27 {strides = array<i32>} : memref<8x8x128xf32, #tpu.memory_space<vmem>>, vector<8x8x8xf32>,
    %c2_40 = arith.constant 2 : index
    %c0_41 = arith.constant 0 : index
    %c0_42 = arith.constant 0 : index
    %29 = vector.load %arg8[%c2_40, %c0_41, %c0_42] : memref<10x10x8xf32, #tpu.memory_space<vmem>>, vector<8x8x8xf32>
    %c0_43 = arith.constant 0 : index
    %c0_44 = arith.constant 0 : index
    %c48 = arith.constant 48 : index
    %30 = vector.load %arg9[%c0_43, %c0_44, %c48] : memref<8x8x128xf32, #tpu.memory_space<vmem>>, vector<8x8x8xf32>
    tpu.vector_store %arg9[%c0_43, %c0_44, %c48], %29 {strides = array<i32>} : memref<8x8x128xf32, #tpu.memory_space<vmem>>, vector<8x8x8xf32>,
    %c2_45 = arith.constant 2 : index
    %c1_46 = arith.constant 1 : index
    %c0_47 = arith.constant 0 : index
    %31 = vector.load %arg8[%c2_45, %c1_46, %c0_47] : memref<10x10x8xf32, #tpu.memory_space<vmem>>, vector<8x8x8xf32>
    %c0_48 = arith.constant 0 : index
    %c0_49 = arith.constant 0 : index
    %c56 = arith.constant 56 : index
    %32 = vector.load %arg9[%c0_48, %c0_49, %c56] : memref<8x8x128xf32, #tpu.memory_space<vmem>>, vector<8x8x8xf32>
    tpu.vector_store %arg9[%c0_48, %c0_49, %c56], %31 {strides = array<i32>} : memref<8x8x128xf32, #tpu.memory_space<vmem>>, vector<8x8x8xf32>,
    %c2_50 = arith.constant 2 : index
    %c2_51 = arith.constant 2 : index
    %c0_52 = arith.constant 0 : index
    %33 = vector.load %arg8[%c2_50, %c2_51, %c0_52] : memref<10x10x8xf32, #tpu.memory_space<vmem>>, vector<8x8x8xf32>
    %c0_53 = arith.constant 0 : index
    %c0_54 = arith.constant 0 : index
    %c64 = arith.constant 64 : index
    %34 = vector.load %arg9[%c0_53, %c0_54, %c64] : memref<8x8x128xf32, #tpu.memory_space<vmem>>, vector<8x8x8xf32>
    tpu.vector_store %arg9[%c0_53, %c0_54, %c64], %33 {strides = array<i32>} : memref<8x8x128xf32, #tpu.memory_space<vmem>>, vector<8x8x8xf32>,
    %c0_55 = arith.constant 0 : index
    %c0_56 = arith.constant 0 : index
    %c0_57 = arith.constant 0 : index
    %35 = vector.load %arg9[%c0_55, %c0_56, %c0_57] : memref<8x8x128xf32, #tpu.memory_space<vmem>>, vector<8x8x128xf32>
    %36 = vector.shape_cast %35 : vector<8x8x128xf32> to vector<64x128xf32>
    %37 = arith.truncf %36 : vector<64x128xf32> to vector<64x128xbf16>
    %c0_58 = arith.constant 0 : index
    %c0_59 = arith.constant 0 : index
    %38 = vector.load %arg2[%c0_58, %c0_59] : memref<128x128xbf16, #tpu.memory_space<vmem>>, vector<128x128xbf16>
    %cst_60 = arith.constant dense<0.000000e+00> : vector<64x128xf32>
    %39 = tpu.matmul %37, %38, %cst_60 {dimension_numbers = #tpu.dot_dimension_numbers<[1], [0], [0], [1], [0, 0, 1, 1], [], []>} : vector<64x128xbf16>, vector<128x128xbf16>, vector<64x128xf32> -> vector<64x128xf32>
    %40 = vector.shape_cast %39 : vector<64x128xf32> to vector<8x8x128xf32>
    %41 = vector.extract_strided_slice %40 {offsets = [0, 0, 0], sizes = [8, 8, 8], strides = [1, 1, 1]} : vector<8x8x128xf32> to vector<8x8x8xf32>
    %c0_61 = arith.constant 0 : index
    %c0_62 = arith.constant 0 : index
    %42 = vector.load %arg5[%c0_61, %c0_62] : memref<1x8xf32, #tpu.memory_space<vmem>>, vector<1x8xf32>
    %43 = vector.shape_cast %42 : vector<1x8xf32> to vector<1x1x8xf32>
    %44 = vector.broadcast %43 : vector<1x1x8xf32> to vector<8x8x8xf32>
    %45 = arith.addf %41, %44 : vector<8x8x8xf32>
    %46 = arith.truncf %45 : vector<8x8x8xf32> to vector<8x8x8xbf16>
    %c0_63 = arith.constant 0 : index
    %c0_64 = arith.constant 0 : index
    %c0_65 = arith.constant 0 : index
    %c0_66 = arith.constant 0 : index
    %47 = vector.load %arg6[%c0_63, %c0_64, %c0_65, %c0_66] : memref<1x8x8x8xbf16, #tpu.memory_space<vmem>>, vector<1x8x8x8xbf16>
    %48 = vector.shape_cast %47 : vector<1x8x8x8xbf16> to vector<8x8x8xbf16>
    %49 = vector.shape_cast %46 : vector<8x8x8xbf16> to vector<1x8x8x8xbf16>
    tpu.vector_store %arg6[%c0_63, %c0_64, %c0_65, %c0_66], %49 {strides = array<i32>} : memref<1x8x8x8xbf16, #tpu.memory_space<vmem>>, vector<1x8x8x8xbf16>,
    %cst_67 = arith.constant dense<0.000000e+00> : vector<8x8xf32>
    %50 = vector.multi_reduction <add>, %45, %cst_67 [0] : vector<8x8x8xf32> to vector<8x8xf32>
    %cst_68 = arith.constant dense<0.000000e+00> : vector<8xf32>
    %51 = vector.multi_reduction <add>, %50, %cst_68 [0] : vector<8x8xf32> to vector<8xf32>
    %52 = vector.shape_cast %51 : vector<8xf32> to vector<1x8xf32>
    %53 = arith.mulf %45, %45 : vector<8x8x8xf32>
    %cst_69 = arith.constant dense<0.000000e+00> : vector<8x8xf32>
    %54 = vector.multi_reduction <add>, %53, %cst_69 [0] : vector<8x8x8xf32> to vector<8x8xf32>
    %cst_70 = arith.constant dense<0.000000e+00> : vector<8xf32>
    %55 = vector.multi_reduction <add>, %54, %cst_70 [0] : vector<8x8xf32> to vector<8xf32>
    %56 = vector.shape_cast %55 : vector<8xf32> to vector<1x8xf32>
    %c0_71 = arith.constant 0 : index
    %c0_72 = arith.constant 0 : index
    %c0_73 = arith.constant 0 : index
    %57 = vector.load %arg7[%c0_71, %c0_72, %c0_73] : memref<1x2x8xf32, #tpu.memory_space<vmem>>, vector<1x1x8xf32>
    %58 = vector.shape_cast %57 : vector<1x1x8xf32> to vector<1x8xf32>
    %59 = vector.shape_cast %52 : vector<1x8xf32> to vector<1x1x8xf32>
    tpu.vector_store %arg7[%c0_71, %c0_72, %c0_73], %59 {strides = array<i32>} : memref<1x2x8xf32, #tpu.memory_space<vmem>>, vector<1x1x8xf32>,
    %c0_74 = arith.constant 0 : index
    %c1_75 = arith.constant 1 : index
    %c0_76 = arith.constant 0 : index
    %60 = vector.load %arg7[%c0_74, %c1_75, %c0_76] : memref<1x2x8xf32, #tpu.memory_space<vmem>>, vector<1x1x8xf32>
    %61 = vector.shape_cast %60 : vector<1x1x8xf32> to vector<1x8xf32>
    %62 = vector.shape_cast %56 : vector<1x8xf32> to vector<1x1x8xf32>
    tpu.vector_store %arg7[%c0_74, %c1_75, %c0_76], %62 {strides = array<i32>} : memref<1x2x8xf32, #tpu.memory_space<vmem>>, vector<1x1x8xf32>,
    return
  }
  func.func @transform_0(%arg0: i32) -> (i32, i32, i32, i32) {
    %c0_i32 = arith.constant 0 : i32
    %c0_i32_0 = arith.constant 0 : i32
    %c0_i32_1 = arith.constant 0 : i32
    %c0_i32_2 = arith.constant 0 : i32
    return %arg0, %c0_i32, %c0_i32_0, %c0_i32_1 : i32, i32, i32, i32
  }
  func.func @transform_1(%arg0: i32) -> (i32, i32) {
    %c0_i32 = arith.constant 0 : i32
    %c0_i32_0 = arith.constant 0 : i32
    %c0_i32_1 = arith.constant 0 : i32
    return %c0_i32, %c0_i32_0 : i32, i32
  }
  func.func @transform_2(%arg0: i32) -> (i32, i32) {
    %c0_i32 = arith.constant 0 : i32
    %c0_i32_0 = arith.constant 0 : i32
    %c0_i32_1 = arith.constant 0 : i32
    return %c0_i32, %c0_i32_0 : i32, i32
  }
  func.func @transform_3(%arg0: i32) -> (i32, i32) {
    %c0_i32 = arith.constant 0 : i32
    %c0_i32_0 = arith.constant 0 : i32
    %c0_i32_1 = arith.constant 0 : i32
    return %c0_i32, %c0_i32_0 : i32, i32
  }
  func.func @transform_4(%arg0: i32) -> (i32, i32) {
    %c0_i32 = arith.constant 0 : i32
    %c0_i32_0 = arith.constant 0 : i32
    %c0_i32_1 = arith.constant 0 : i32
    return %c0_i32, %c0_i32_0 : i32, i32
  }
  func.func @transform_5(%arg0: i32) -> (i32, i32, i32, i32) {
    %c0_i32 = arith.constant 0 : i32
    %c0_i32_0 = arith.constant 0 : i32
    %c0_i32_1 = arith.constant 0 : i32
    %c0_i32_2 = arith.constant 0 : i32
    return %arg0, %c0_i32, %c0_i32_0, %c0_i32_1 : i32, i32, i32, i32
  }
  func.func @transform_6(%arg0: i32) -> (i32, i32, i32) {
    %c0_i32 = arith.constant 0 : i32
    %c0_i32_0 = arith.constant 0 : i32
    %c0_i32_1 = arith.constant 0 : i32
    return %arg0, %c0_i32, %c0_i32_0 : i32, i32, i32
  }
}

</mosaic_0001>

<bundles_post_ra>
// kernel: down_forward.5
= control target key start
LH: loop header
LB: loop body
LE: loop exit
PB: predicated region body
PF: predicated region fallthrough
CT: control target
= control target key end

     0   :  { %s361_s12 = smov 0   ;;  %s399_s0 = inlined_call_operand.vmem [shape: bf16[2,8,8,8], index: 0, kind: input, shape index: {}]   ;;  %s400_s1 = inlined_call_operand.vmem [shape: f32[1,8], index: 1, kind: input, shape index: {}]   ;;  %s401_s2 = inlined_call_operand.vmem [shape: f32[1,8], index: 2, kind: input, shape index: {}]   ;;  %s402_s3 = inlined_call_operand.vmem [shape: bf16[2,8,8,8], index: 3, kind: output, shape index: {}]  }
   0x1 LB: > { %s291_s13 = sadd.s32 4294967295, %s339_s12   ;;  %p295_p0 = scmp.ge.s32.totalorder %s339_s12, 1  ;;  %s339_s12 = sphi %s361_s12, %s13_s12  }
   0x2   : > { %p137_p1 = scmp.lt.s32.totalorder %s339_s12, 3 }
   0x4   : > { %p138_p2 = pnand %p295_p0, %p137_p1 }
   0x5   : > { %p161_p3 = scmp.lt.s32.totalorder (!%p138_p2), %s291_s13, 1 }
   0x6   : > { %141 = sbr.rel (%p138_p2) target bundleno = 33 (0x21), region = 32 }
   0xb   : > { %s404_s13 = smov (!%p161_p3, %s291_s13), 1  ;;  %v331_v0 = vld [vmem:[%s400_s1] ss:$0 sm:$0xff]  ;;  %vm227_vm0 = vcmask 60416  }
   0xc   : > { %s302_s14 = sshll.u32 %s404_s13, 5  ;;  %v332_v5 = vld [vmem:[%s401_s2] ss:$0 sm:$0xff] }
   0xd   : > { %s165_s17 = scalar_lea.vmem %s399_s0, %s302_s14  ;;  %s170_s24 = scalar_lea.vmem %s402_s3, %s302_s14 }
   0xe   : > { %v305_v1 = vld [vmem:[%s165_s17] sm:$0xff]   ;;  %v320_v2 = vld [vmem:[%s165_s17 + $0x8] sm:$0xff]   ;;  %v321_v3 = vld [vmem:[%s165_s17 + $0x10] sm:$0xff]  }
   0xf   : > { %v306_v4 = vunpack.c.l.bf16 %v305_v1  ;;  %v307_v6 = vunpack.c.h.bf16 %v305_v1  ;;  %v310_v7 = vunpack.c.l.bf16 %v320_v2  ;;  %v311_v8 = vunpack.c.h.bf16 %v320_v2  ;;  %v322_v9 = vld [vmem:[%s165_s17 + $0x18] sm:$0xff]  }
  0x10   : > { %v314_v10 = vunpack.c.l.bf16 %v321_v3  ;;  %v315_v11 = vunpack.c.h.bf16 %v321_v3  ;;  %v318_v12 = vunpack.c.l.bf16 %v322_v9  ;;  %v319_v13 = vunpack.c.h.bf16 %v322_v9 }
  0x11   : > { %v191_v14 = vmul.f32 %v331_v0, %v306_v4  ;;  %v192_v15 = vmul.f32 %v331_v0, %v307_v6  ;;  %v193_v16 = vmul.f32 %v331_v0, %v310_v7  ;;  %v194_v17 = vmul.f32 %v331_v0, %v311_v8 }
  0x12   : > { %v195_v18 = vmul.f32 %v331_v0, %v314_v10  ;;  %v196_v19 = vmul.f32 %v331_v0, %v315_v11  ;;  %v197_v20 = vmul.f32 %v331_v0, %v318_v12  ;;  %v198_v21 = vmul.f32 %v331_v0, %v319_v13 }
  0x13   : > { %v203_v22 = vadd.f32 %v332_v5, %v191_v14  ;;  %v204_v23 = vadd.f32 %v332_v5, %v192_v15  ;;  %v205_v24 = vadd.f32 %v332_v5, %v193_v16  ;;  %v206_v25 = vadd.f32 %v332_v5, %v194_v17 }
  0x14   : > { %v207_v26 = vadd.f32 %v332_v5, %v195_v18  ;;  %v208_v27 = vadd.f32 %v332_v5, %v196_v19  ;;  %v209_v28 = vadd.f32 %v332_v5, %v197_v20  ;;  %v210_v29 = vadd.f32 %v332_v5, %v198_v21 }
  0x15   : > { %v211_v30 = vmax.f32 %v203_v22, 0.0  ;;  %v212_v31 = vmax.f32 %v204_v23, 0.0  ;;  %v213_v32 = vmax.f32 %v205_v24, 0.0  ;;  %v214_v33 = vmax.f32 %v206_v25, 0.0 }
  0x16   : > { %v215_v34 = vmax.f32 %v207_v26, 0.0  ;;  %v216_v35 = vmax.f32 %v208_v27, 0.0  ;;  %v217_v39 = vmax.f32 %v209_v28, 0.0  ;;  %v218_v41 = vmax.f32 %v210_v29, 0.0 }
  0x17   : > { %v219_v36 = vpack.c.bf16 %v211_v30, %v211_v30  ;;  %v220_v37 = vpack.c.bf16 %v212_v31, %v212_v31  ;;  %v221_v38 = vpack.c.bf16 %v213_v32, %v213_v32  ;;  %v222_v40 = vpack.c.bf16 %v214_v33, %v214_v33 }
  0x18   : > { %v223_v42 = vpack.c.bf16 %v215_v34, %v215_v34  ;;  %v224_v43 = vpack.c.bf16 %v216_v35, %v216_v35  ;;  %v225_v44 = vpack.c.bf16 %v217_v39, %v217_v39  ;;  %v226_v45 = vpack.c.bf16 %v218_v41, %v218_v41 }
  0x19   : > { %228 = vst.msk [vmem:[%s170_s24] sm:$0xf] %vm227_vm0, %v219_v36 }
  0x1a   : > { %229 = vst.msk [vmem:[%s170_s24 + $0x4] sm:$0xf] %vm227_vm0, %v220_v37 }
  0x1b   : > { %230 = vst.msk [vmem:[%s170_s24 + $0x8] sm:$0xf] %vm227_vm0, %v221_v38 }
  0x1c   : > { %231 = vst.msk [vmem:[%s170_s24 + $0xc] sm:$0xf] %vm227_vm0, %v222_v40 }
  0x1d   : > { %232 = vst.msk [vmem:[%s170_s24 + $0x10] sm:$0xf] %vm227_vm0, %v223_v42 }
  0x1e   : > { %233 = vst.msk [vmem:[%s170_s24 + $0x14] sm:$0xf] %vm227_vm0, %v224_v43 }
  0x1f   : > { %234 = vst.msk [vmem:[%s170_s24 + $0x18] sm:$0xf] %vm227_vm0, %v225_v44 }
  0x20   : > { %235 = vst.msk [vmem:[%s170_s24 + $0x1c] sm:$0xf] %vm227_vm0, %v226_v45 }
  0x21 PF: > { %s13_s12 = sadd.s32 1, %s339_s12  }
  0x22   : > { %p10_p4 = scmp.ge.s32.totalorder %s13_s12, 4  }
  0x24   :  { %12 = sbr.rel (!%p10_p4) target bundleno = 1 (0x1), region = 62 }

// kernel: down_forward.3
= control target key start
LH: loop header
LB: loop body
LE: loop exit
PB: predicated region body
PF: predicated region fallthrough
CT: control target
= control target key end

     0   :  { %s1176_s21 = smov 0   ;;  %s1448_s0 = inlined_call_operand.vmem [shape: bf16[2,8,8,4], index: 0, kind: input, shape index: {}]   ;;  %s1449_s1 = inlined_call_operand.vmem [shape: bf16[128,128], index: 1, kind: input, shape index: {}]   ;;  %s1450_s2 = inlined_call_operand.vmem [shape: f32[1,4], index: 2, kind: input, shape index: {}]   ;;  %s1451_s3 = inlined_call_operand.vmem [shape: f32[1,4], index: 3, kind: input, shape index: {}]   ;;  %s1452_s4 = inlined_call_operand.vmem [shape: f32[1,8], index: 4, kind: input, shape index: {}]   ;;  %s1453_s5 = inlined_call_operand.vmem [shape: bf16[2,8,8,8], index: 5, kind: output, shape index: {0}]   ;;  %s1454_s6 = inlined_call_operand.vmem [shape: f32[2,2,8], index: 6, kind: output, shape index: {1}]  }
   0x1 LB: > { %s1008_s2 = sadd.s32 4294967295, %s1130_s21   ;;  %p1012_p0 = scmp.ge.s32.totalorder %s1130_s21, 1  ;;  %s1130_s21 = sphi %s1176_s21, %s17_s21  }
   0x2   : > { %p215_p1 = scmp.lt.s32.totalorder %s1130_s21, 3 }
   0x4   : > { %p216_p2 = pnand %p1012_p0, %p215_p1 }
   0x5   : > { %p249_p3 = scmp.lt.s32.totalorder (!%p216_p2), %s1008_s2, 1  ;;  %p1018_p4 = scmp.ne.s32.totalorder (!%p216_p2), %s1008_s2, 0 }
   0x6   : > { %219 = sbr.rel (%p216_p2) target bundleno = 506 (0x1fa), region = 40 }
   0xb   : > { %s250_s3 = scalar_select %p249_p3, %s1008_s2, 1 }
   0xc   : > { %266 = sbr.rel (%p1018_p4) target bundleno = 46 (0x2e), region = 44 }
   0xd   : > { %s1053_s22 = sshll.u32 %s250_s3, 5  ;;  %s1017_s23 = sshll.u32 %s250_s3, 1 }
   0xe   : > { %s1187_s26 = scalar_lea.vmem %s1448_s0, %s1053_s22  ;;  %s1192_s29 = scalar_lea.vmem %s1453_s5, %s1053_s22 }
   0xf   : > { %s1197_s8 = scalar_lea.vmem %s1454_s6, %s1017_s23 }
  0x11   : > { %vm267_vm0 = vcmask 31744   ;;  %v1132_v0 = vmov 0.0   ;;  %vm269_vm1 = vcmask 25600  }
  0x12   : > { %268 = vst.msk [vmem:[#allocation2] sm:$0xff] %vm267_vm0, %v1132_v0 }
  0x13   : > { %271 = vst.msk [vmem:[#allocation2 + $0x10] sm:$0xff] %vm267_vm0, %v1132_v0 }
  0x14   : > { %273 = vst.msk [vmem:[#allocation2 + $0x20] sm:$0xff] %vm267_vm0, %v1132_v0 }
  0x15   : > { %275 = vst.msk [vmem:[#allocation2 + $0x30] sm:$0xff] %vm267_vm0, %v1132_v0 }
  0x16   : > { %277 = vst.msk [vmem:[#allocation2 + $0x40] sm:$0xff] %vm267_vm0, %v1132_v0 }
  0x17   : > { %279 = vst.msk [vmem:[#allocation2 + $0x50] sm:$0xff] %vm267_vm0, %v1132_v0 }
  0x18   : > { %281 = vst.msk [vmem:[#allocation2 + $0x60] sm:$0xff] %vm267_vm0, %v1132_v0 }
  0x19   : > { %283 = vst.msk [vmem:[#allocation2 + $0x70] sm:$0xff] %vm267_vm0, %v1132_v0 }
  0x1a   : > { %285 = vst.msk [vmem:[#allocation2 + $0x80] sm:$0xff] %vm267_vm0, %v1132_v0 }
  0x1b   : > { %287 = vst.msk [vmem:[#allocation2 + $0x90] sm:$0xff] %vm267_vm0, %v1132_v0 }
  0x1c   : > { %289 = vst [vmem:[#allocation3] sm:$0xff] %v1132_v0 }
  0x1d   : > { %290 = vst [vmem:[#allocation3 + $0x8] sm:$0xff] %v1132_v0 }
  0x1e   : > { %291 = vst [vmem:[#allocation3 + $0x10] sm:$0xff] %v1132_v0 }
  0x1f   : > { %292 = vst [vmem:[#allocation3 + $0x18] sm:$0xff] %v1132_v0 }
  0x20   : > { %293 = vst [vmem:[#allocation3 + $0x20] sm:$0xff] %v1132_v0 }
  0x21   : > { %294 = vst [vmem:[#allocation3 + $0x28] sm:$0xff] %v1132_v0 }
  0x22   : > { %295 = vst [vmem:[#allocation3 + $0x30] sm:$0xff] %v1132_v0 }
  0x23   : > { %296 = vst [vmem:[#allocation3 + $0x38] sm:$0xff] %v1132_v0 }
  0x24   : > { %270 = vst.msk [vmem:[#allocation2 + $0x8] sm:$0x3] %vm269_vm1, %v1132_v0 }
  0x25   : > { %272 = vst.msk [vmem:[#allocation2 + $0x18] sm:$0x3] %vm269_vm1, %v1132_v0 }
  0x26   : > { %274 = vst.msk [vmem:[#allocation2 + $0x28] sm:$0x3] %vm269_vm1, %v1132_v0 }
  0x27   : > { %276 = vst.msk [vmem:[#allocation2 + $0x38] sm:$0x3] %vm269_vm1, %v1132_v0 }
  0x28   : > { %278 = vst.msk [vmem:[#allocation2 + $0x48] sm:$0x3] %vm269_vm1, %v1132_v0 }
  0x29   : > { %280 = vst.msk [vmem:[#allocation2 + $0x58] sm:$0x3] %vm269_vm1, %v1132_v0 }
  0x2a   : > { %282 = vst.msk [vmem:[#allocation2 + $0x68] sm:$0x3] %vm269_vm1, %v1132_v0 }
  0x2b   : > { %284 = vst.msk [vmem:[#allocation2 + $0x78] sm:$0x3] %vm269_vm1, %v1132_v0 }
  0x2c   : > { %286 = vst.msk [vmem:[#allocation2 + $0x88] sm:$0x3] %vm269_vm1, %v1132_v0 }
  0x2d   : > { %288 = vst.msk [vmem:[#allocation2 + $0x98] sm:$0x3] %vm269_vm1, %v1132_v0 }
  0x2e PF: > { %v388_v1 = vld [vmem:[#allocation2 + $0x2] sm:$0xff]  ;;  %vm314_vm2 = vcmask 31744   ;;  %s1133_s9 = smov 8   ;;  %s1134_s10 = smov 4   ;;  %v1080_v7 = vld [vmem:[%s1187_s26 + $0x10] sm:$0xff]   ;;  %v1081_v21 = vld [vmem:[%s1187_s26 + $0x18] sm:$0xff]  }
  0x2f   : > { %v339_v2 = vld [vmem:[#allocation2 + $0x1] sm:$0xff]  ;;  %404 = vrot.lane.b32.xlu1 %v388_v1, %s1133_s9  ;;  %v1073_v9 = vunpack.c.l.bf16 %v1080_v7  ;;  %v1074_v11 = vunpack.c.h.bf16 %v1080_v7  ;;  %s1135_s11 = smov 12   ;;  %v1077_v22 = vunpack.c.l.bf16 %v1081_v21  ;;  %s1136_s12 = smov 16   ;;  %v1078_v36 = vunpack.c.h.bf16 %v1081_v21  ;;  %v592_v57 = vld [vmem:[#allocation2 + $0x90] sm:$0xff]  ;;  %v1062_v1 = vld [vmem:[%s1449_s1 + $0x38] sm:$0xff] }
  0x30   : > { %v1064_v3 = vld [vmem:[%s1187_s26] sm:$0xff]   ;;  %355 = vrot.lane.b32.xlu0 %v339_v2, %s1134_s10  ;;  %v1079_v6 = vld [vmem:[%s1187_s26 + $0x8] sm:$0xff]   ;;  %s1137_s13 = smov 20   ;;  %s1138_s14 = smov 24   ;;  %vm379_vm3 = vcmask 64544   ;;  %vm428_vm4 = vcmask 97344   ;;  %808 = vmatpush.bf16.msra.mxu0 %v1062_v1 }
  0x31   : > { %v1065_v4 = vunpack.c.l.bf16 %v1064_v3  ;;  %v1066_v5 = vunpack.c.h.bf16 %v1064_v3  ;;  %v1070_v8 = vunpack.c.h.bf16 %v1079_v6  ;;  %v1069_v10 = vunpack.c.l.bf16 %v1079_v6  ;;  %319 = vst.msk [vmem:[#allocation2 + $0x51] sm:$0xff] %vm314_vm2, %v1073_v9  ;;  %s1139_s15 = smov 28   ;;  %v323_v34 = vld [vmem:[#allocation2] sm:$0xff]  ;;  %s1140_s16 = smov 32   ;;  %v1061_v3 = vld [vmem:[%s1449_s1 + $0x30] sm:$0xff]  ;;  %1083 = vmatpush.bf16.msra.mxu2 %v1062_v1  ;;  %1082 = vmatpush.bf16.msra.mxu1 %v1062_v1  ;;  %v1060_v7 = vld [vmem:[%s1449_s1 + $0x28] sm:$0xff] }
  0x32   : > { %320 = vst.msk [vmem:[#allocation2 + $0x61] sm:$0xff] %vm314_vm2, %v1074_v11  ;;  %vm477_vm5 = vcmask 130144   ;;  %vm526_vm6 = vcmask 162944   ;;  %vm575_vm7 = vcmask 195744   ;;  %vm625_vm8 = vcmask 228544   ;;  %1084 = vmatpush.bf16.msra.mxu3 %v1062_v1 }
  0x33   : > { %315 = vst.msk [vmem:[#allocation2 + $0x11] sm:$0xff] %vm314_vm2, %v1065_v4  ;;  %vm674_vm9 = vcmask 261344   ;;  %vm723_vm10 = vcmask 294144   ;;  %vm857_vm11 = vcmask 60416   ;;  %vm866_vm12 = vcmask 64512  }
  0x34   : > { %316 = vst.msk [vmem:[#allocation2 + $0x21] sm:$0xff] %vm314_vm2, %v1066_v5  ;;  %v641_v61 = vld [vmem:[#allocation2 + $0x91] sm:$0xff]  ;;  %809 = vmatpush.bf16.msra.mxu0 %v1061_v3  ;;  %vm919_vm13 = vcmask 57344  }
  0x35   : > { %318 = vst.msk [vmem:[#allocation2 + $0x41] sm:$0xff] %vm314_vm2, %v1070_v8  ;;  %v690_v2 = vld [vmem:[#allocation2 + $0x92] sm:$0xff]  ;;  %1086 = vmatpush.bf16.msra.mxu2 %v1061_v3  ;;  %1085 = vmatpush.bf16.msra.mxu1 %v1061_v3  ;;  %v1059_v8 = vld [vmem:[%s1449_s1 + $0x20] sm:$0xff] }
  0x36   : > { %317 = vst.msk [vmem:[#allocation2 + $0x31] sm:$0xff] %vm314_vm2, %v1069_v10  ;;  %1087 = vmatpush.bf16.msra.mxu3 %v1061_v3 }
  0x37   : > { %321 = vst.msk [vmem:[#allocation2 + $0x71] sm:$0xff] %vm314_vm2, %v1077_v22 }
  0x38   : > { %v1222_v18 = vld [vmem:[#allocation2 + $0x51] sm:$0xff]  ;;  %331 = vst.msk [vmem:[#allocation3] sm:$0xff] %vm314_vm2, %v323_v34  ;;  %810 = vmatpush.bf16.msra.mxu0 %v1060_v7 }
  0x39   : > { %v1218_v17 = vld [vmem:[#allocation2 + $0x60] sm:$0xff]  ;;  %v1226_v19 = vld [vmem:[#allocation2 + $0x50] sm:$0xff]  ;;  %322 = vst.msk [vmem:[#allocation2 + $0x81] sm:$0xff] %vm314_vm2, %v1078_v36  ;;  %1089 = vmatpush.bf16.msra.mxu2 %v1060_v7  ;;  %1088 = vmatpush.bf16.msra.mxu1 %v1060_v7 }
  0x3a   : > { %v389_v12 = vld [vmem:[#allocation2 + $0x12] sm:$0xff]  ;;  %337 = vst.msk [vmem:[#allocation3 + $0x30] sm:$0xff] %vm314_vm2, %v1218_v17  ;;  %v491_v30 = vld [vmem:[#allocation2 + $0x61] sm:$0xff]  ;;  %1090 = vmatpush.bf16.msra.mxu3 %v1060_v7 }
  0x3b   : > { %v340_v13 = vld [vmem:[#allocation2 + $0x11] sm:$0xff]  ;;  %406 = vrot.lane.b32.xlu1 %v389_v12, %s1133_s9  ;;  %v438_v15 = vld [vmem:[#allocation2 + $0x20] sm:$0xff]  ;;  %336 = vst.msk [vmem:[#allocation3 + $0x28] sm:$0xff] %vm314_vm2, %v1226_v19 }
  0x3c   : > { %v437_v14 = vld [vmem:[#allocation2 + $0x10] sm:$0xff]  ;;  %357 = vrot.lane.b32.xlu0 %v340_v13, %s1134_s10  ;;  %v1213_v16 = vld [vmem:[#allocation2 + $0x41] sm:$0xff]  ;;  %333 = vst.msk [vmem:[#allocation3 + $0x10] sm:$0xff] %vm314_vm2, %v438_v15  ;;  %811 = vmatpush.bf16.msra.mxu0 %v1059_v8 }
  0x3d   : > { %332 = vst.msk [vmem:[#allocation3 + $0x8] sm:$0xff] %vm314_vm2, %v437_v14  ;;  %363 = vrot.lane.b32.xlu2 %v1213_v16, %s1134_s10  ;;  %v1232_v20 = vld [vmem:[#allocation2 + $0x52] sm:$0xff]  ;;  %v1235_v23 = vld [vmem:[#allocation2 + $0x42] sm:$0xff]  ;;  %1092 = vmatpush.bf16.msra.mxu2 %v1059_v8 }
  0x3e   : > { %v342_v24 = vld [vmem:[#allocation2 + $0x31] sm:$0xff]  ;;  %v341_v25 = vld [vmem:[#allocation2 + $0x21] sm:$0xff]  ;;  %1091 = vmatpush.bf16.msra.mxu1 %v1059_v8  ;;  %1093 = vmatpush.bf16.msra.mxu3 %v1059_v8 }
  0x3f   : > { %v1246_v26 = vld [vmem:[#allocation2 + $0x40] sm:$0xff]  ;;  %v586_v27 = vld [vmem:[#allocation2 + $0x30] sm:$0xff] }
  0x40   : > { %335 = vst.msk [vmem:[#allocation3 + $0x20] sm:$0xff] %vm314_vm2, %v1246_v26  ;;  %v391_v28 = vld [vmem:[#allocation2 + $0x32] sm:$0xff]  ;;  %v390_v29 = vld [vmem:[#allocation2 + $0x22] sm:$0xff] }
  0x41   : > { %334 = vst.msk [vmem:[#allocation3 + $0x18] sm:$0xff] %vm314_vm2, %v586_v27  ;;  %v590_v31 = vld [vmem:[#allocation2 + $0x70] sm:$0xff]  ;;  %v540_v33 = vld [vmem:[#allocation2 + $0x62] sm:$0xff] }
  0x42   : > { %338 = vst.msk [vmem:[#allocation3 + $0x38] sm:$0xff] %vm314_vm2, %v590_v31  ;;  %v346_v32 = vld [vmem:[#allocation2 + $0x71] sm:$0xff]  ;;  %v444_v39 = vld [vmem:[#allocation2 + $0x80] sm:$0xff] }
  0x43   : > { %455 = vrot.lane.b32.xlu1 %v438_v15, %s1135_s11  ;;  %v395_v35 = vld [vmem:[#allocation2 + $0x72] sm:$0xff]  ;;  %v493_v46 = vld [vmem:[#allocation2 + $0x81] sm:$0xff] }
  0x44   : > { %453 = vrot.lane.b32.xlu0 %v437_v14, %s1135_s11  ;;  %v542_v53 = vld [vmem:[#allocation2 + $0x82] sm:$0xff] }
  0x45   : > { %365 = vrot.lane.b32.xlu2 %v1222_v18, %s1134_s10 }
  0x4b   : > { %502 = vrot.lane.b32.xlu1 %v340_v13, %s1136_s12  ;;  %v1057_v13 = vld [vmem:[%s1449_s1 + $0x10] sm:$0xff] }
  0x4c   : > { %414 = vrot.lane.b32.xlu0 %v1232_v20, %s1133_s9 }
  0x4d   : > { %412 = vrot.lane.b32.xlu2 %v1235_v23, %s1133_s9 }
  0x53   : > { %361 = vrot.lane.b32.xlu1 %v342_v24, %s1134_s10 }
  0x54   : > { %359 = vrot.lane.b32.xlu0 %v341_v25, %s1134_s10 }
  0x55   : > { %504 = vrot.lane.b32.xlu2 %v341_v25, %s1136_s12 }
  0x5b   : > { %551 = vrot.lane.b32.xlu1 %v389_v12, %s1137_s13  ;;  %v1058_v12 = vld [vmem:[%s1449_s1 + $0x18] sm:$0xff] }
  0x5c   : > { %463 = vrot.lane.b32.xlu0 %v1218_v17, %s1135_s11  ;;  %812 = vmatpush.bf16.msra.mxu0 %v1058_v12 }
  0x5d   : > { %461 = vrot.lane.b32.xlu2 %v1226_v19, %s1135_s11  ;;  %1095 = vmatpush.bf16.msra.mxu2 %v1058_v12 }
  0x5e   : > { %1094 = vmatpush.bf16.msra.mxu1 %v1058_v12  ;;  %1096 = vmatpush.bf16.msra.mxu3 %v1058_v12 }
  0x60   : > { %813 = vmatpush.bf16.msra.mxu0 %v1057_v13 }
  0x61   : > { %1098 = vmatpush.bf16.msra.mxu2 %v1057_v13 }
  0x62   : > { %1097 = vmatpush.bf16.msra.mxu1 %v1057_v13  ;;  %1099 = vmatpush.bf16.msra.mxu3 %v1057_v13 }
  0x63   : > { %410 = vrot.lane.b32.xlu1 %v391_v28, %s1133_s9 }
  0x64   : > { %408 = vrot.lane.b32.xlu0 %v390_v29, %s1133_s9 }
  0x65   : > { %553 = vrot.lane.b32.xlu2 %v390_v29, %s1137_s13 }
  0x6b   : > { %601 = vrot.lane.b32.xlu1 %v438_v15, %s1138_s14 }
  0x6c   : > { %512 = vrot.lane.b32.xlu0 %v491_v30, %s1136_s12 }
  0x6d   : > { %510 = vrot.lane.b32.xlu2 %v1222_v18, %s1136_s12 }
  0x73   : > { %369 = vrot.lane.b32.xlu1 %v346_v32, %s1134_s10 }
  0x74   : > { %367 = vrot.lane.b32.xlu0 %v491_v30, %s1134_s10 }
  0x75   : > { %603 = vrot.lane.b32.xlu2 %v586_v27, %s1138_s14 }
  0x7b   : > { %559 = vrot.lane.b32.xlu1 %v1232_v20, %s1137_s13 }
  0x7c   : > { %459 = vrot.lane.b32.xlu0 %v1246_v26, %s1135_s11 }
  0x7d   : > { %457 = vrot.lane.b32.xlu2 %v586_v27, %s1135_s11 }
  0x83   : > { %652 = vrot.lane.b32.xlu1 %v342_v24, %s1139_s15 }
  0x84   : > { %650 = vrot.lane.b32.xlu0 %v341_v25, %s1139_s15 }
  0x85   : > { %561 = vrot.lane.b32.xlu2 %v540_v33, %s1137_s13 }
  0x8b   : > { %506 = vrot.lane.b32.xlu1 %v342_v24, %s1136_s12 }
  0x8c   : > { %418 = vrot.lane.b32.xlu0 %v395_v35, %s1133_s9 }
  0x8d   : > { %416 = vrot.lane.b32.xlu2 %v540_v33, %s1133_s9 }
  0x93   : > { %611 = vrot.lane.b32.xlu1 %v590_v31, %s1138_s14 }
  0x94   : > { %609 = vrot.lane.b32.xlu0 %v1218_v17, %s1138_s14  ;;  %v1056_v17 = vld [vmem:[%s1449_s1 + $0x8] sm:$0xff] }
  0x95   : > { %508 = vrot.lane.b32.xlu2 %v1213_v16, %s1136_s12  ;;  %814 = vmatpush.bf16.msra.mxu0 %v1056_v17 }
  0x96   : > { %1101 = vmatpush.bf16.msra.mxu2 %v1056_v17  ;;  %1100 = vmatpush.bf16.msra.mxu1 %v1056_v17 }
  0x97   : > { %v364_v37 = vpop.permute.xlu2 %363  ;;  %1102 = vmatpush.bf16.msra.mxu3 %v1056_v17 }
  0x98   : > { %384 = vst.msk [vmem:[#allocation3 + $0x20] sm:$0xff] %vm379_vm3, %v364_v37 }
  0x9b   : > { %465 = vrot.lane.b32.xlu1 %v590_v31, %s1135_s11 }
  0x9c   : > { %701 = vrot.lane.b32.xlu0 %v391_v28, %s1140_s16 }
  0x9d   : > { %699 = vrot.lane.b32.xlu2 %v390_v29, %s1140_s16 }
  0x9f   : > { %v366_v38 = vpop.permute.xlu2 %365 }
  0xa0   : > { %385 = vst.msk [vmem:[#allocation3 + $0x28] sm:$0xff] %vm379_vm3, %v366_v38 }
  0xa1   : > { %v405_v40 = vpop.permute.xlu1 %404 }
  0xa2   : > { %v356_v41 = vpop.permute.xlu0 %355 }
  0xa3   : > { %557 = vrot.lane.b32.xlu1 %v1235_v23, %s1137_s13  ;;  %380 = vst.msk [vmem:[#allocation3] sm:$0xff] %vm379_vm3, %v356_v41 }
  0xa4   : > { %555 = vrot.lane.b32.xlu0 %v391_v28, %s1137_s13  ;;  %429 = vst.msk [vmem:[#allocation3] sm:$0xff] %vm428_vm4, %v405_v40 }
  0xa5   : > { %467 = vrot.lane.b32.xlu2 %v444_v39, %s1135_s11 }
  0xa7   : > { %v413_v42 = vpop.permute.xlu2 %412 }
  0xa8   : > { %433 = vst.msk [vmem:[#allocation3 + $0x20] sm:$0xff] %vm428_vm4, %v413_v42 }
  0xab   : > { %514 = vrot.lane.b32.xlu1 %v346_v32, %s1136_s12 }
  0xac   : > { %660 = vrot.lane.b32.xlu0 %v346_v32, %s1139_s15 }
  0xad   : > { %v407_v43 = vpop.permute.xlu1 %406  ;;  %658 = vrot.lane.b32.xlu2 %v491_v30, %s1139_s15 }
  0xae   : > { %v358_v44 = vpop.permute.xlu0 %357 }
  0xaf   : > { %381 = vst.msk [vmem:[#allocation3 + $0x8] sm:$0xff] %vm379_vm3, %v358_v44  ;;  %v505_v45 = vpop.permute.xlu2 %504 }
  0xb0   : > { %430 = vst.msk [vmem:[#allocation3 + $0x8] sm:$0xff] %vm428_vm4, %v407_v43 }
  0xb3   : > { %607 = vrot.lane.b32.xlu1 %v1226_v19, %s1138_s14 }
  0xb4   : > { %605 = vrot.lane.b32.xlu0 %v1246_v26, %s1138_s14 }
  0xb5   : > { %v456_v47 = vpop.permute.xlu1 %455  ;;  %516 = vrot.lane.b32.xlu2 %v493_v46, %s1136_s12 }
  0xb6   : > { %v454_v48 = vpop.permute.xlu0 %453  ;;  %479 = vst.msk [vmem:[#allocation3 + $0x8] sm:$0xff] %vm477_vm5, %v456_v47 }
  0xb7   : > { %478 = vst.msk [vmem:[#allocation3] sm:$0xff] %vm477_vm5, %v454_v48  ;;  %v462_v49 = vpop.permute.xlu2 %461 }
  0xb8   : > { %528 = vst.msk [vmem:[#allocation3 + $0x8] sm:$0xff] %vm526_vm6, %v505_v45 }
  0xb9   : > { %482 = vst.msk [vmem:[#allocation3 + $0x20] sm:$0xff] %vm477_vm5, %v462_v49 }
  0xbb   : > { %563 = vrot.lane.b32.xlu1 %v395_v35, %s1137_s13 }
  0xbc   : > { %709 = vrot.lane.b32.xlu0 %v395_v35, %s1140_s16 }
  0xbd   : > { %v503_v50 = vpop.permute.xlu1 %502  ;;  %707 = vrot.lane.b32.xlu2 %v540_v33, %s1140_s16 }
  0xbe   : > { %v415_v51 = vpop.permute.xlu0 %414  ;;  %527 = vst.msk [vmem:[#allocation3] sm:$0xff] %vm526_vm6, %v503_v50 }
  0xbf   : > { %434 = vst.msk [vmem:[#allocation3 + $0x28] sm:$0xff] %vm428_vm4, %v415_v51  ;;  %v554_v52 = vpop.permute.xlu2 %553 }
  0xc0   : > { %577 = vst.msk [vmem:[#allocation3 + $0x8] sm:$0xff] %vm575_vm7, %v554_v52 }
  0xc3   : > { %656 = vrot.lane.b32.xlu1 %v1222_v18, %s1139_s15  ;;  %v1055_v18 = vld [vmem:[%s1449_s1] sm:$0xff] }
  0xc4   : > { %654 = vrot.lane.b32.xlu0 %v1213_v16, %s1139_s15  ;;  %815 = vmatpush.bf16.msra.mxu0 %v1055_v18 }
  0xc5   : > { %v362_v54 = vpop.permute.xlu1 %361  ;;  %565 = vrot.lane.b32.xlu2 %v542_v53, %s1137_s13  ;;  %1104 = vmatpush.bf16.msra.mxu2 %v1055_v18 }
  0xc6   : > { %v360_v55 = vpop.permute.xlu0 %359  ;;  %383 = vst.msk [vmem:[#allocation3 + $0x18] sm:$0xff] %vm379_vm3, %v362_v54  ;;  %1103 = vmatpush.bf16.msra.mxu1 %v1055_v18  ;;  %1105 = vmatpush.bf16.msra.mxu3 %v1055_v18 }
  0xc7   : > { %382 = vst.msk [vmem:[#allocation3 + $0x10] sm:$0xff] %vm379_vm3, %v360_v55  ;;  %v511_v56 = vpop.permute.xlu2 %510 }
  0xc8   : > { %531 = vst.msk [vmem:[#allocation3 + $0x20] sm:$0xff] %vm526_vm6, %v511_v56 }
  0xcb   : > { %703 = vrot.lane.b32.xlu1 %v1235_v23, %s1140_s16 }
  0xcc   : > { %615 = vrot.lane.b32.xlu0 %v592_v57, %s1138_s14 }
  0xcd   : > { %v552_v58 = vpop.permute.xlu1 %551  ;;  %613 = vrot.lane.b32.xlu2 %v444_v39, %s1138_s14 }
  0xce   : > { %v464_v59 = vpop.permute.xlu0 %463  ;;  %576 = vst.msk [vmem:[#allocation3] sm:$0xff] %vm575_vm7, %v552_v58 }
  0xcf   : > { %483 = vst.msk [vmem:[#allocation3 + $0x28] sm:$0xff] %vm477_vm5, %v464_v59  ;;  %v604_v60 = vpop.permute.xlu2 %603 }
  0xd0   : > { %627 = vst.msk [vmem:[#allocation3 + $0x8] sm:$0xff] %vm625_vm8, %v604_v60 }
  0xd3   : > { %664 = vrot.lane.b32.xlu1 %v641_v61, %s1139_s15 }
  0xd4   : > { %662 = vrot.lane.b32.xlu0 %v493_v46, %s1139_s15 }
  0xd5   : > { %v411_v62 = vpop.permute.xlu1 %410  ;;  %705 = vrot.lane.b32.xlu2 %v1232_v20, %s1140_s16 }
  0xd6   : > { %v409_v63 = vpop.permute.xlu0 %408  ;;  %432 = vst.msk [vmem:[#allocation3 + $0x18] sm:$0xff] %vm428_vm4, %v411_v62 }
  0xd7   : > { %431 = vst.msk [vmem:[#allocation3 + $0x10] sm:$0xff] %vm428_vm4, %v409_v63  ;;  %v458_v0 = vpop.permute.xlu2 %457  ;;  %v1123_v63 = vld [vmem:[%s1452_s4] ss:$0 sm:$0xff] }
  0xd8   : > { %480 = vst.msk [vmem:[#allocation3 + $0x10] sm:$0xff] %vm477_vm5, %v458_v0 }
  0xdc   : > { %713 = vrot.lane.b32.xlu0 %v690_v2, %s1140_s16 }
  0xdd   : > { %v602_v4 = vpop.permute.xlu1 %601  ;;  %711 = vrot.lane.b32.xlu2 %v542_v53, %s1140_s16 }
  0xde   : > { %v513_v5 = vpop.permute.xlu0 %512  ;;  %626 = vst.msk [vmem:[#allocation3] sm:$0xff] %vm625_vm8, %v602_v4 }
  0xdf   : > { %532 = vst.msk [vmem:[#allocation3 + $0x28] sm:$0xff] %vm526_vm6, %v513_v5  ;;  %v562_v6 = vpop.permute.xlu2 %561 }
  0xe0   : > { %581 = vst.msk [vmem:[#allocation3 + $0x28] sm:$0xff] %vm575_vm7, %v562_v6 }
  0xe5   : > { %v370_v9 = vpop.permute.xlu1 %369 }
  0xe6   : > { %v368_v10 = vpop.permute.xlu0 %367  ;;  %387 = vst.msk [vmem:[#allocation3 + $0x38] sm:$0xff] %vm379_vm3, %v370_v9 }
  0xe7   : > { %386 = vst.msk [vmem:[#allocation3 + $0x30] sm:$0xff] %vm379_vm3, %v368_v10  ;;  %v417_v11 = vpop.permute.xlu2 %416 }
  0xe8   : > { %435 = vst.msk [vmem:[#allocation3 + $0x30] sm:$0xff] %vm428_vm4, %v417_v11 }
  0xed   : > { %v560_v14 = vpop.permute.xlu1 %559 }
  0xee   : > { %v460_v15 = vpop.permute.xlu0 %459  ;;  %580 = vst.msk [vmem:[#allocation3 + $0x20] sm:$0xff] %vm575_vm7, %v560_v14 }
  0xef   : > { %481 = vst.msk [vmem:[#allocation3 + $0x18] sm:$0xff] %vm477_vm5, %v460_v15  ;;  %v509_v16 = vpop.permute.xlu2 %508 }
  0xf0   : > { %530 = vst.msk [vmem:[#allocation3 + $0x18] sm:$0xff] %vm526_vm6, %v509_v16 }
  0xf5   : > { %v653_v19 = vpop.permute.xlu1 %652 }
  0xf6   : > { %v651_v20 = vpop.permute.xlu0 %650  ;;  %676 = vst.msk [vmem:[#allocation3 + $0x8] sm:$0xff] %vm674_vm9, %v653_v19 }
  0xf7   : > { %675 = vst.msk [vmem:[#allocation3] sm:$0xff] %vm674_vm9, %v651_v20  ;;  %v700_v21 = vpop.permute.xlu2 %699 }
  0xf8   : > { %724 = vst.msk [vmem:[#allocation3] sm:$0xff] %vm723_vm10, %v700_v21 }
  0xfd   : > { %v507_v22 = vpop.permute.xlu1 %506 }
  0xfe   : > { %v419_v23 = vpop.permute.xlu0 %418  ;;  %529 = vst.msk [vmem:[#allocation3 + $0x10] sm:$0xff] %vm526_vm6, %v507_v22 }
  0xff   : > { %436 = vst.msk [vmem:[#allocation3 + $0x38] sm:$0xff] %vm428_vm4, %v419_v23  ;;  %v468_v24 = vpop.permute.xlu2 %467  ;;  %v732_v31 = vld [vmem:[#allocation3] sm:$0xff] }
 0x100   : > { %485 = vst.msk [vmem:[#allocation3 + $0x38] sm:$0xff] %vm477_vm5, %v468_v24 }
 0x105   : > { %v612_v25 = vpop.permute.xlu1 %611 }
 0x106   : > { %v610_v26 = vpop.permute.xlu0 %609  ;;  %631 = vst.msk [vmem:[#allocation3 + $0x28] sm:$0xff] %vm625_vm8, %v612_v25 }
 0x107   : > { %630 = vst.msk [vmem:[#allocation3 + $0x20] sm:$0xff] %vm625_vm8, %v610_v26  ;;  %v659_v27 = vpop.permute.xlu2 %658 }
 0x108   : > { %679 = vst.msk [vmem:[#allocation3 + $0x20] sm:$0xff] %vm674_vm9, %v659_v27 }
 0x10d   : > { %v466_v28 = vpop.permute.xlu1 %465 }
 0x10e   : > { %v702_v29 = vpop.permute.xlu0 %701  ;;  %484 = vst.msk [vmem:[#allocation3 + $0x30] sm:$0xff] %vm477_vm5, %v466_v28 }
 0x10f   : > { %725 = vst.msk [vmem:[#allocation3 + $0x8] sm:$0xff] %vm723_vm10, %v702_v29  ;;  %v517_v30 = vpop.permute.xlu2 %516 }
 0x110   : > { %534 = vst.msk [vmem:[#allocation3 + $0x38] sm:$0xff] %vm526_vm6, %v517_v30 }
 0x115   : > { %v558_v32 = vpop.permute.xlu1 %557 }
 0x116   : > { %v556_v33 = vpop.permute.xlu0 %555  ;;  %579 = vst.msk [vmem:[#allocation3 + $0x18] sm:$0xff] %vm575_vm7, %v558_v32  ;;  %v733_v34 = vld [vmem:[#allocation3 + $0x8] sm:$0xff] }
 0x117   : > { %578 = vst.msk [vmem:[#allocation3 + $0x10] sm:$0xff] %vm575_vm7, %v556_v33  ;;  %v740_v35 = vpack.c.bf16 %v733_v34, %v732_v31  ;;  %v708_v36 = vpop.permute.xlu2 %707 }
 0x118   : > { %728 = vst.msk [vmem:[#allocation3 + $0x20] sm:$0xff] %vm723_vm10, %v708_v36 }
 0x119   : > { %816 = vmatmul.bf16.vlgmr.msra.gmra.mxu0 %v740_v35 }
 0x11d   : > { %v515_v37 = vpop.permute.xlu1 %514 }
 0x11e   : > { %v661_v38 = vpop.permute.xlu0 %660  ;;  %533 = vst.msk [vmem:[#allocation3 + $0x30] sm:$0xff] %vm526_vm6, %v515_v37 }
 0x11f   : > { %680 = vst.msk [vmem:[#allocation3 + $0x28] sm:$0xff] %vm674_vm9, %v661_v38  ;;  %v566_v39 = vpop.permute.xlu2 %565  ;;  %v736_v45 = vld [vmem:[#allocation3 + $0x20] sm:$0xff] }
 0x120   : > { %583 = vst.msk [vmem:[#allocation3 + $0x38] sm:$0xff] %vm575_vm7, %v566_v39 }
 0x125   : > { %v608_v40 = vpop.permute.xlu1 %607 }
 0x126   : > { %v606_v41 = vpop.permute.xlu0 %605  ;;  %629 = vst.msk [vmem:[#allocation3 + $0x18] sm:$0xff] %vm625_vm8, %v608_v40 }
 0x127   : > { %628 = vst.msk [vmem:[#allocation3 + $0x10] sm:$0xff] %vm625_vm8, %v606_v41  ;;  %v614_v42 = vpop.permute.xlu2 %613 }
 0x12d   : > { %v564_v43 = vpop.permute.xlu1 %563 }
 0x12e   : > { %v710_v44 = vpop.permute.xlu0 %709  ;;  %582 = vst.msk [vmem:[#allocation3 + $0x30] sm:$0xff] %vm575_vm7, %v564_v43 }
 0x12f   : > { %729 = vst.msk [vmem:[#allocation3 + $0x28] sm:$0xff] %vm723_vm10, %v710_v44  ;;  %v706_v46 = vpop.permute.xlu2 %705 }
 0x130   : > { %632 = vst.msk [vmem:[#allocation3 + $0x30] sm:$0xff] %vm625_vm8, %v614_v42 }
 0x135   : > { %v657_v47 = vpop.permute.xlu1 %656 }
 0x136   : > { %v655_v48 = vpop.permute.xlu0 %654  ;;  %678 = vst.msk [vmem:[#allocation3 + $0x18] sm:$0xff] %vm674_vm9, %v657_v47  ;;  %v737_v49 = vld [vmem:[#allocation3 + $0x28] sm:$0xff] }
 0x137   : > { %677 = vst.msk [vmem:[#allocation3 + $0x10] sm:$0xff] %vm674_vm9, %v655_v48  ;;  %v742_v50 = vpack.c.bf16 %v737_v49, %v736_v45  ;;  %v712_v54 = vpop.permute.xlu2 %711 }
 0x138   : > { %727 = vst.msk [vmem:[#allocation3 + $0x18] sm:$0xff] %vm723_vm10, %v706_v46 }
 0x139   : > { %826 = vmatmul.bf16.vlgmr.msra.gmra.mxu2 %v742_v50 }
 0x13d   : > { %v704_v51 = vpop.permute.xlu1 %703 }
 0x13e   : > { %v616_v52 = vpop.permute.xlu0 %615  ;;  %726 = vst.msk [vmem:[#allocation3 + $0x10] sm:$0xff] %vm723_vm10, %v704_v51 }
 0x13f   : > { %633 = vst.msk [vmem:[#allocation3 + $0x38] sm:$0xff] %vm625_vm8, %v616_v52  ;;  %v735_v53 = vld [vmem:[#allocation3 + $0x18] sm:$0xff] }
 0x145   : > { %v734_v56 = vld [vmem:[#allocation3 + $0x10] sm:$0xff]  ;;  %v665_v57 = vpop.permute.xlu1 %664 }
 0x146   : > { %v663_v55 = vpop.permute.xlu0 %662  ;;  %v741_v58 = vpack.c.bf16 %v735_v53, %v734_v56  ;;  %682 = vst.msk [vmem:[#allocation3 + $0x38] sm:$0xff] %vm674_vm9, %v665_v57 }
 0x147   : > { %681 = vst.msk [vmem:[#allocation3 + $0x30] sm:$0xff] %vm674_vm9, %v663_v55 }
 0x148   : > { %821 = vmatmul.bf16.vlgmr.msra.gmra.mxu1 %v741_v58  ;;  %730 = vst.msk [vmem:[#allocation3 + $0x30] sm:$0xff] %vm723_vm10, %v712_v54 }
 0x14e   : > { %v714_v59 = vpop.permute.xlu0 %713 }
 0x14f   : > { %731 = vst.msk [vmem:[#allocation3 + $0x38] sm:$0xff] %vm723_vm10, %v714_v59  ;;  %v738_v60 = vld [vmem:[#allocation3 + $0x30] sm:$0xff] }
 0x156   : > { %v739_v61 = vld [vmem:[#allocation3 + $0x38] sm:$0xff] }
 0x157   : > { %v743_v62 = vpack.c.bf16 %v739_v61, %v738_v60 }
 0x159   : > { %831 = vmatmul.bf16.vlgmr.msra.gmra.mxu3 %v743_v62 }
 0x196   : > { %v817_v0 = vpop.f32.mrf.mxu0 }
 0x197   : > { %v841_v1 = vadd.f32 %v1123_v63, %v817_v0 }
 0x199   : > { %v849_v2 = vpack.c.bf16 %v841_v1, %v841_v1  ;;  %v889_v19 = vmul.f32 %v841_v1, %v841_v1  ;;  %v867_v22 = vsel %vm866_vm12, %v841_v1, 0.0 }
 0x19b   : > { %858 = vst.msk [vmem:[%s1192_s29] sm:$0xf] %vm857_vm11, %v849_v2  ;;  %v897_v27 = vsel %vm866_vm12, %v889_v19, 0.0 }
 0x19e   : > { %v819_v3 = vpop.f32.mrf.mxu0 }
 0x19f   : > { %v842_v4 = vadd.f32 %v1123_v63, %v819_v3 }
 0x1a1   : > { %v850_v5 = vpack.c.bf16 %v842_v4, %v842_v4  ;;  %v890_v18 = vmul.f32 %v842_v4, %v842_v4  ;;  %v868_v20 = vsel %vm866_vm12, %v842_v4, 0.0 }
 0x1a2   : > { %v869_v26 = vadd.f32 %v868_v20, %v867_v22 }
 0x1a3   : > { %859 = vst.msk [vmem:[%s1192_s29 + $0x4] sm:$0xf] %vm857_vm11, %v850_v5  ;;  %v898_v23 = vsel %vm866_vm12, %v890_v18, 0.0 }
 0x1a4   : > { %v899_v30 = vadd.f32 %v898_v23, %v897_v27 }
 0x1bc   : > { %v827_v6 = vpop.f32.mrf.mxu2 }
 0x1bd   : > { %v845_v7 = vadd.f32 %v1123_v63, %v827_v6 }
 0x1bf   : > { %v853_v8 = vpack.c.bf16 %v845_v7, %v845_v7  ;;  %v893_v36 = vmul.f32 %v845_v7, %v845_v7  ;;  %v874_v39 = vsel %vm866_vm12, %v845_v7, 0.0 }
 0x1c1   : > { %862 = vst.msk [vmem:[%s1192_s29 + $0x10] sm:$0xf] %vm857_vm11, %v853_v8  ;;  %v904_v42 = vsel %vm866_vm12, %v893_v36, 0.0 }
 0x1c4   : > { %v829_v9 = vpop.f32.mrf.mxu2 }
 0x1c5   : > { %v846_v10 = vadd.f32 %v1123_v63, %v829_v9  ;;  %v822_v11 = vpop.f32.mrf.mxu1 }
 0x1c6   : > { %v843_v12 = vadd.f32 %v1123_v63, %v822_v11 }
 0x1c7   : > { %v854_v13 = vpack.c.bf16 %v846_v10, %v846_v10  ;;  %v894_v43 = vmul.f32 %v846_v10, %v846_v10  ;;  %v876_v46 = vsel %vm866_vm12, %v846_v10, 0.0 }
 0x1c8   : > { %v851_v14 = vpack.c.bf16 %v843_v12, %v843_v12  ;;  %v891_v21 = vmul.f32 %v843_v12, %v843_v12  ;;  %v870_v24 = vsel %vm866_vm12, %v843_v12, 0.0 }
 0x1c9   : > { %863 = vst.msk [vmem:[%s1192_s29 + $0x14] sm:$0xf] %vm857_vm11, %v854_v13  ;;  %v871_v31 = vadd.f32 %v870_v24, %v869_v26  ;;  %v906_v50 = vsel %vm866_vm12, %v894_v43, 0.0 }
 0x1ca   : > { %860 = vst.msk [vmem:[%s1192_s29 + $0x8] sm:$0xf] %vm857_vm11, %v851_v14  ;;  %v900_v28 = vsel %vm866_vm12, %v891_v21, 0.0 }
 0x1cb   : > { %v901_v33 = vadd.f32 %v900_v28, %v899_v30 }
 0x1cd   : > { %v824_v15 = vpop.f32.mrf.mxu1 }
 0x1ce   : > { %v844_v16 = vadd.f32 %v1123_v63, %v824_v15 }
 0x1d0   : > { %v852_v17 = vpack.c.bf16 %v844_v16, %v844_v16  ;;  %v892_v25 = vmul.f32 %v844_v16, %v844_v16  ;;  %v872_v29 = vsel %vm866_vm12, %v844_v16, 0.0 }
 0x1d1   : > { %v873_v34 = vadd.f32 %v872_v29, %v871_v31 }
 0x1d2   : > { %861 = vst.msk [vmem:[%s1192_s29 + $0xc] sm:$0xf] %vm857_vm11, %v852_v17  ;;  %v902_v32 = vsel %vm866_vm12, %v892_v25, 0.0 }
 0x1d3   : > { %v903_v38 = vadd.f32 %v902_v32, %v901_v33  ;;  %v875_v41 = vadd.f32 %v874_v39, %v873_v34 }
 0x1d5   : > { %v905_v45 = vadd.f32 %v904_v42, %v903_v38  ;;  %v877_v48 = vadd.f32 %v876_v46, %v875_v41 }
 0x1d7   : > { %v907_v54 = vadd.f32 %v906_v50, %v905_v45 }
 0x1dc   : > { %v832_v35 = vpop.f32.mrf.mxu3 }
 0x1dd   : > { %v847_v37 = vadd.f32 %v1123_v63, %v832_v35 }
 0x1df   : > { %v855_v40 = vpack.c.bf16 %v847_v37, %v847_v37  ;;  %v895_v44 = vmul.f32 %v847_v37, %v847_v37  ;;  %v878_v47 = vsel %vm866_vm12, %v847_v37, 0.0 }
 0x1e0   : > { %v879_v53 = vadd.f32 %v878_v47, %v877_v48 }
 0x1e1   : > { %864 = vst.msk [vmem:[%s1192_s29 + $0x18] sm:$0xf] %vm857_vm11, %v855_v40  ;;  %v908_v51 = vsel %vm866_vm12, %v895_v44, 0.0 }
 0x1e2   : > { %v909_v58 = vadd.f32 %v908_v51, %v907_v54 }
 0x1e4   : > { %v834_v49 = vpop.f32.mrf.mxu3 }
 0x1e5   : > { %v848_v52 = vadd.f32 %v1123_v63, %v834_v49 }
 0x1e7   : > { %v856_v55 = vpack.c.bf16 %v848_v52, %v848_v52  ;;  %v880_v56 = vsel %vm866_vm12, %v848_v52, 0.0  ;;  %v896_v57 = vmul.f32 %v848_v52, %v848_v52 }
 0x1e8   : > { %v881_v59 = vadd.f32 %v880_v56, %v879_v53 }
 0x1e9   : > { %865 = vst.msk [vmem:[%s1192_s29 + $0x1c] sm:$0xf] %vm857_vm11, %v856_v55  ;;  %v910_v60 = vsel %vm866_vm12, %v896_v57, 0.0 }
 0x1ea   : > { %v882_v61 = vsel %vm866_vm12, %v881_v59, 0.0  ;;  %v911_v62 = vadd.f32 %v910_v60, %v909_v58 }
 0x1eb   : > { %v883_v0 = vrot.slane %v882_v61, 4 }
 0x1ec   : > { %v912_v63 = vsel %vm866_vm12, %v911_v62, 0.0 }
 0x1ed   : > { %v884_v1 = vadd.f32 %v883_v0, %v882_v61  ;;  %v913_v2 = vrot.slane %v912_v63, 4 }
 0x1ef   : > { %v885_v3 = vrot.slane %v884_v1, 2  ;;  %v914_v4 = vadd.f32 %v913_v2, %v912_v63 }
 0x1f1   : > { %v886_v5 = vadd.f32 %v885_v3, %v884_v1  ;;  %v915_v6 = vrot.slane %v914_v4, 2 }
 0x1f3   : > { %v887_v7 = vrot.slane %v886_v5, 1  ;;  %v916_v8 = vadd.f32 %v915_v6, %v914_v4 }
 0x1f5   : > { %v888_v9 = vadd.f32 %v887_v7, %v886_v5  ;;  %v917_v10 = vrot.slane %v916_v8, 1 }
 0x1f7   : > { %v918_v11 = vadd.f32 %v917_v10, %v916_v8  ;;  %920 = vst.msk [vmem:[%s1197_s8] sm:$0x1] %vm919_vm13, %v888_v9 }
 0x1f9   : > { %921 = vst.msk [vmem:[%s1197_s8 + $0x1] sm:$0x1] %vm919_vm13, %v918_v11 }
 0x1fa PF: > { %s17_s21 = sadd.s32 1, %s1130_s21  }
 0x1fb   : > { %p14_p5 = scmp.ge.s32.totalorder %s17_s21, 4  }
 0x1fd   :  { %16 = sbr.rel (!%p14_p5) target bundleno = 1 (0x1), region = 88 }

// kernel: down_forward.4
= control target key start
LH: loop header
LB: loop body
LE: loop exit
PB: predicated region body
PF: predicated region fallthrough
CT: control target
= control target key end

     0   :  { %s1209_s21 = smov 0   ;;  %s1512_s0 = inlined_call_operand.vmem [shape: bf16[2,8,8,8], index: 0, kind: input, shape index: {}]   ;;  %s1513_s1 = inlined_call_operand.vmem [shape: bf16[128,128], index: 1, kind: input, shape index: {}]   ;;  %s1514_s2 = inlined_call_operand.vmem [shape: f32[1,8], index: 2, kind: input, shape index: {}]   ;;  %s1515_s3 = inlined_call_operand.vmem [shape: f32[1,8], index: 3, kind: input, shape index: {}]   ;;  %s1516_s4 = inlined_call_operand.vmem [shape: f32[1,8], index: 4, kind: input, shape index: {}]   ;;  %s1517_s5 = inlined_call_operand.vmem [shape: bf16[2,8,8,8], index: 5, kind: output, shape index: {0}]   ;;  %s1518_s6 = inlined_call_operand.vmem [shape: f32[2,2,8], index: 6, kind: output, shape index: {1}]  }
   0x1 LB: > { %s1039_s22 = sadd.s32 4294967295, %s1163_s21   ;;  %p1043_p0 = scmp.ge.s32.totalorder %s1163_s21, 1  ;;  %s1163_s21 = sphi %s1209_s21, %s17_s21  }
   0x2   : > { %p215_p1 = scmp.lt.s32.totalorder %s1163_s21, 3 }
   0x4   : > { %p216_p2 = pnand %p1043_p0, %p215_p1 }
   0x5   : > { %p249_p3 = scmp.lt.s32.totalorder (!%p216_p2), %s1039_s22, 1  ;;  %p1049_p4 = scmp.ne.s32.totalorder (!%p216_p2), %s1039_s22, 0 }
   0x6   : > { %219 = sbr.rel (%p216_p2) target bundleno = 512 (0x200), region = 40 }
   0xb   : > { %s250_s23 = scalar_select %p249_p3, %s1039_s22, 1 }
   0xc   : > { %266 = sbr.rel (%p1049_p4) target bundleno = 46 (0x2e), region = 44 }
   0xd   : > { %s1084_s24 = sshll.u32 %s250_s23, 5  ;;  %s1048_s25 = sshll.u32 %s250_s23, 1 }
   0xe   : > { %s1220_s28 = scalar_lea.vmem %s1512_s0, %s1084_s24  ;;  %s1225_s7 = scalar_lea.vmem %s1517_s5, %s1084_s24 }
   0xf   : > { %s1230_s10 = scalar_lea.vmem %s1518_s6, %s1048_s25 }
  0x11   : > { %vm267_vm0 = vcmask 64512   ;;  %v1165_v0 = vmov 0.0   ;;  %vm269_vm1 = vcmask 58368  }
  0x12   : > { %268 = vst.msk [vmem:[#allocation2] sm:$0xff] %vm267_vm0, %v1165_v0 }
  0x13   : > { %271 = vst.msk [vmem:[#allocation2 + $0x10] sm:$0xff] %vm267_vm0, %v1165_v0 }
  0x14   : > { %273 = vst.msk [vmem:[#allocation2 + $0x20] sm:$0xff] %vm267_vm0, %v1165_v0 }
  0x15   : > { %275 = vst.msk [vmem:[#allocation2 + $0x30] sm:$0xff] %vm267_vm0, %v1165_v0 }
  0x16   : > { %277 = vst.msk [vmem:[#allocation2 + $0x40] sm:$0xff] %vm267_vm0, %v1165_v0 }
  0x17   : > { %279 = vst.msk [vmem:[#allocation2 + $0x50] sm:$0xff] %vm267_vm0, %v1165_v0 }
  0x18   : > { %281 = vst.msk [vmem:[#allocation2 + $0x60] sm:$0xff] %vm267_vm0, %v1165_v0 }
  0x19   : > { %283 = vst.msk [vmem:[#allocation2 + $0x70] sm:$0xff] %vm267_vm0, %v1165_v0 }
  0x1a   : > { %285 = vst.msk [vmem:[#allocation2 + $0x80] sm:$0xff] %vm267_vm0, %v1165_v0 }
  0x1b   : > { %287 = vst.msk [vmem:[#allocation2 + $0x90] sm:$0xff] %vm267_vm0, %v1165_v0 }
  0x1c   : > { %289 = vst [vmem:[#allocation3] sm:$0xff] %v1165_v0 }
  0x1d   : > { %290 = vst [vmem:[#allocation3 + $0x8] sm:$0xff] %v1165_v0 }
  0x1e   : > { %291 = vst [vmem:[#allocation3 + $0x10] sm:$0xff] %v1165_v0 }
  0x1f   : > { %292 = vst [vmem:[#allocation3 + $0x18] sm:$0xff] %v1165_v0 }
  0x20   : > { %293 = vst [vmem:[#allocation3 + $0x20] sm:$0xff] %v1165_v0 }
  0x21   : > { %294 = vst [vmem:[#allocation3 + $0x28] sm:$0xff] %v1165_v0 }
  0x22   : > { %295 = vst [vmem:[#allocation3 + $0x30] sm:$0xff] %v1165_v0 }
  0x23   : > { %296 = vst [vmem:[#allocation3 + $0x38] sm:$0xff] %v1165_v0 }
  0x24   : > { %270 = vst.msk [vmem:[#allocation2 + $0x8] sm:$0x3] %vm269_vm1, %v1165_v0 }
  0x25   : > { %272 = vst.msk [vmem:[#allocation2 + $0x18] sm:$0x3] %vm269_vm1, %v1165_v0 }
  0x26   : > { %274 = vst.msk [vmem:[#allocation2 + $0x28] sm:$0x3] %vm269_vm1, %v1165_v0 }
  0x27   : > { %276 = vst.msk [vmem:[#allocation2 + $0x38] sm:$0x3] %vm269_vm1, %v1165_v0 }
  0x28   : > { %278 = vst.msk [vmem:[#allocation2 + $0x48] sm:$0x3] %vm269_vm1, %v1165_v0 }
  0x29   : > { %280 = vst.msk [vmem:[#allocation2 + $0x58] sm:$0x3] %vm269_vm1, %v1165_v0 }
  0x2a   : > { %282 = vst.msk [vmem:[#allocation2 + $0x68] sm:$0x3] %vm269_vm1, %v1165_v0 }
  0x2b   : > { %284 = vst.msk [vmem:[#allocation2 + $0x78] sm:$0x3] %vm269_vm1, %v1165_v0 }
  0x2c   : > { %286 = vst.msk [vmem:[#allocation2 + $0x88] sm:$0x3] %vm269_vm1, %v1165_v0 }
  0x2d   : > { %288 = vst.msk [vmem:[#allocation2 + $0x98] sm:$0x3] %vm269_vm1, %v1165_v0 }
  0x2e PF: > { %v420_v1 = vld [vmem:[#allocation2 + $0x2] sm:$0xff]  ;;  %s1166_s11 = smov 16   ;;  %s1167_s12 = smov 8   ;;  %v1238_v5 = vld [vmem:[%s1514_s2] ss:$0 sm:$0xff]  ;;  %v1111_v12 = vld [vmem:[%s1220_s28 + $0x10] sm:$0xff]  }
  0x2f   : > { %v371_v2 = vld [vmem:[#allocation2 + $0x1] sm:$0xff]  ;;  %436 = vrot.lane.b32.xlu1 %v420_v1, %s1166_s11  ;;  %v1243_v7 = vld [vmem:[%s1515_s3] ss:$0 sm:$0xff]  ;;  %v1104_v14 = vunpack.c.l.bf16 %v1111_v12  ;;  %v1105_v15 = vunpack.c.h.bf16 %v1111_v12  ;;  %vm346_vm2 = vcmask 64512   ;;  %v1112_v39 = vld [vmem:[%s1220_s28 + $0x18] sm:$0xff]   ;;  %s1168_s17 = smov 24  }
  0x30   : > { %v1095_v3 = vld [vmem:[%s1220_s28] sm:$0xff]   ;;  %387 = vrot.lane.b32.xlu0 %v371_v2, %s1167_s12  ;;  %v1110_v8 = vld [vmem:[%s1220_s28 + $0x8] sm:$0xff]   ;;  %v1108_v41 = vunpack.c.l.bf16 %v1112_v39  ;;  %s1169_s18 = smov 32   ;;  %s1170_s19 = smov 40   ;;  %v1109_v58 = vunpack.c.h.bf16 %v1112_v39  ;;  %vm411_vm3 = vcmask 130112   ;;  %vm460_vm4 = vcmask 195712  }
  0x31   : > { %v1096_v4 = vunpack.c.l.bf16 %v1095_v3  ;;  %v1097_v6 = vunpack.c.h.bf16 %v1095_v3  ;;  %v1101_v11 = vunpack.c.h.bf16 %v1110_v8  ;;  %v1100_v13 = vunpack.c.l.bf16 %v1110_v8  ;;  %s1171_s20 = smov 48   ;;  %s1172_s22 = smov 56   ;;  %v355_v57 = vld [vmem:[#allocation2] sm:$0xff]  ;;  %v1088_v39 = vld [vmem:[%s1513_s1 + $0x10] sm:$0xff] }
  0x32   : > { %v321_v20 = vmul.f32 %v1238_v5, %v1104_v14  ;;  %v322_v21 = vmul.f32 %v1238_v5, %v1105_v15  ;;  %v323_v42 = vmul.f32 %v1238_v5, %v1108_v41  ;;  %363 = vst.msk [vmem:[#allocation3] sm:$0xff] %vm346_vm2, %v355_v57  ;;  %v324_v59 = vmul.f32 %v1238_v5, %v1109_v58  ;;  %s1173_s23 = smov 64  }
  0x33   : > { %v317_v9 = vmul.f32 %v1238_v5, %v1096_v4  ;;  %v318_v10 = vmul.f32 %v1238_v5, %v1097_v6  ;;  %v320_v18 = vmul.f32 %v1238_v5, %v1101_v11  ;;  %v319_v19 = vmul.f32 %v1238_v5, %v1100_v13 }
  0x34   : > { %v333_v26 = vadd.f32 %v1243_v7, %v321_v20  ;;  %v334_v27 = vadd.f32 %v1243_v7, %v322_v21  ;;  %v335_v43 = vadd.f32 %v1243_v7, %v323_v42  ;;  %v336_v60 = vadd.f32 %v1243_v7, %v324_v59 }
  0x35   : > { %v329_v16 = vadd.f32 %v1243_v7, %v317_v9  ;;  %v330_v17 = vadd.f32 %v1243_v7, %v318_v10  ;;  %v332_v24 = vadd.f32 %v1243_v7, %v320_v18  ;;  %v331_v25 = vadd.f32 %v1243_v7, %v319_v19  ;;  %v624_v19 = vld [vmem:[#allocation2 + $0x90] sm:$0xff] }
  0x36   : > { %v341_v30 = vmax.f32 %v333_v26, 0.0  ;;  %v342_v31 = vmax.f32 %v334_v27, 0.0  ;;  %v343_v45 = vmax.f32 %v335_v43, 0.0  ;;  %v344_v62 = vmax.f32 %v336_v60, 0.0  ;;  %v1093_v27 = vld [vmem:[%s1513_s1 + $0x38] sm:$0xff]  ;;  %v1087_v43 = vld [vmem:[%s1513_s1 + $0x8] sm:$0xff] }
  0x37   : > { %v337_v22 = vmax.f32 %v329_v16, 0.0  ;;  %v338_v23 = vmax.f32 %v330_v17, 0.0  ;;  %v340_v28 = vmax.f32 %v332_v24, 0.0  ;;  %v339_v29 = vmax.f32 %v331_v25, 0.0  ;;  %840 = vmatpush.bf16.msra.mxu0 %v1093_v27  ;;  %1114 = vmatpush.bf16.msra.mxu2 %v1093_v27 }
  0x38   : > { %351 = vst.msk [vmem:[#allocation2 + $0x51] sm:$0xff] %vm346_vm2, %v341_v30  ;;  %vm509_vm5 = vcmask 261312   ;;  %vm558_vm6 = vcmask 326912   ;;  %vm607_vm7 = vcmask 392512   ;;  %vm657_vm8 = vcmask 458112   ;;  %1113 = vmatpush.bf16.msra.mxu1 %v1093_v27  ;;  %1115 = vmatpush.bf16.msra.mxu3 %v1093_v27 }
  0x39   : > { %347 = vst.msk [vmem:[#allocation2 + $0x11] sm:$0xff] %vm346_vm2, %v337_v22  ;;  %vm706_vm9 = vcmask 523712   ;;  %vm755_vm10 = vcmask 589312   ;;  %vm889_vm11 = vcmask 60416   ;;  %vm950_vm12 = vcmask 57344  }
  0x3a   : > { %348 = vst.msk [vmem:[#allocation2 + $0x21] sm:$0xff] %vm346_vm2, %v338_v23  ;;  %v673_v23 = vld [vmem:[#allocation2 + $0x91] sm:$0xff] }
  0x3b   : > { %350 = vst.msk [vmem:[#allocation2 + $0x41] sm:$0xff] %vm346_vm2, %v340_v28  ;;  %v722_v28 = vld [vmem:[#allocation2 + $0x92] sm:$0xff] }
  0x3c   : > { %349 = vst.msk [vmem:[#allocation2 + $0x31] sm:$0xff] %vm346_vm2, %v339_v29  ;;  %v1092_v29 = vld [vmem:[%s1513_s1 + $0x30] sm:$0xff] }
  0x3d   : > { %352 = vst.msk [vmem:[#allocation2 + $0x61] sm:$0xff] %vm346_vm2, %v342_v31  ;;  %841 = vmatpush.bf16.msra.mxu0 %v1092_v29  ;;  %1117 = vmatpush.bf16.msra.mxu2 %v1092_v29 }
  0x3e   : > { %353 = vst.msk [vmem:[#allocation2 + $0x71] sm:$0xff] %vm346_vm2, %v343_v45  ;;  %1116 = vmatpush.bf16.msra.mxu1 %v1092_v29  ;;  %1118 = vmatpush.bf16.msra.mxu3 %v1092_v29 }
  0x3f   : > { %v1277_v38 = vld [vmem:[#allocation2 + $0x51] sm:$0xff]  ;;  %354 = vst.msk [vmem:[#allocation2 + $0x81] sm:$0xff] %vm346_vm2, %v344_v62 }
  0x40   : > { %v421_v32 = vld [vmem:[#allocation2 + $0x12] sm:$0xff] }
  0x41   : > { %v372_v33 = vld [vmem:[#allocation2 + $0x11] sm:$0xff]  ;;  %438 = vrot.lane.b32.xlu1 %v421_v32, %s1166_s11  ;;  %v470_v35 = vld [vmem:[#allocation2 + $0x20] sm:$0xff] }
  0x42   : > { %v469_v34 = vld [vmem:[#allocation2 + $0x10] sm:$0xff]  ;;  %389 = vrot.lane.b32.xlu0 %v372_v33, %s1167_s12  ;;  %v1268_v36 = vld [vmem:[#allocation2 + $0x41] sm:$0xff]  ;;  %365 = vst.msk [vmem:[#allocation3 + $0x10] sm:$0xff] %vm346_vm2, %v470_v35 }
  0x43   : > { %364 = vst.msk [vmem:[#allocation3 + $0x8] sm:$0xff] %vm346_vm2, %v469_v34  ;;  %395 = vrot.lane.b32.xlu2 %v1268_v36, %s1167_s12  ;;  %v1282_v40 = vld [vmem:[#allocation2 + $0x50] sm:$0xff]  ;;  %v1292_v46 = vld [vmem:[#allocation2 + $0x42] sm:$0xff] }
  0x44   : > { %v1273_v37 = vld [vmem:[#allocation2 + $0x60] sm:$0xff]  ;;  %368 = vst.msk [vmem:[#allocation3 + $0x28] sm:$0xff] %vm346_vm2, %v1282_v40  ;;  %v1290_v44 = vld [vmem:[#allocation2 + $0x52] sm:$0xff] }
  0x45   : > { %369 = vst.msk [vmem:[#allocation3 + $0x30] sm:$0xff] %vm346_vm2, %v1273_v37  ;;  %v374_v47 = vld [vmem:[#allocation2 + $0x31] sm:$0xff]  ;;  %v373_v48 = vld [vmem:[#allocation2 + $0x21] sm:$0xff] }
  0x46   : > { %v1303_v49 = vld [vmem:[#allocation2 + $0x40] sm:$0xff]  ;;  %v618_v50 = vld [vmem:[#allocation2 + $0x30] sm:$0xff] }
  0x47   : > { %367 = vst.msk [vmem:[#allocation3 + $0x20] sm:$0xff] %vm346_vm2, %v1303_v49  ;;  %v423_v51 = vld [vmem:[#allocation2 + $0x32] sm:$0xff]  ;;  %v422_v52 = vld [vmem:[#allocation2 + $0x22] sm:$0xff] }
  0x48   : > { %366 = vst.msk [vmem:[#allocation3 + $0x18] sm:$0xff] %vm346_vm2, %v618_v50  ;;  %v523_v53 = vld [vmem:[#allocation2 + $0x61] sm:$0xff]  ;;  %v622_v54 = vld [vmem:[#allocation2 + $0x70] sm:$0xff] }
  0x49   : > { %487 = vrot.lane.b32.xlu1 %v470_v35, %s1168_s17  ;;  %370 = vst.msk [vmem:[#allocation3 + $0x38] sm:$0xff] %vm346_vm2, %v622_v54  ;;  %v378_v55 = vld [vmem:[#allocation2 + $0x71] sm:$0xff]  ;;  %v1329_v56 = vld [vmem:[#allocation2 + $0x62] sm:$0xff] }
  0x4a   : > { %485 = vrot.lane.b32.xlu0 %v469_v34, %s1168_s17  ;;  %v427_v61 = vld [vmem:[#allocation2 + $0x72] sm:$0xff]  ;;  %v476_v3 = vld [vmem:[#allocation2 + $0x80] sm:$0xff] }
  0x4b   : > { %397 = vrot.lane.b32.xlu2 %v1277_v38, %s1167_s12  ;;  %v525_v8 = vld [vmem:[#allocation2 + $0x81] sm:$0xff] }
  0x4c   : > { %v574_v15 = vld [vmem:[#allocation2 + $0x82] sm:$0xff] }
  0x4d   : > { %v1090_v34 = vld [vmem:[%s1513_s1 + $0x20] sm:$0xff] }
  0x51   : > { %534 = vrot.lane.b32.xlu1 %v372_v33, %s1169_s18  ;;  %v1091_v33 = vld [vmem:[%s1513_s1 + $0x28] sm:$0xff] }
  0x52   : > { %446 = vrot.lane.b32.xlu0 %v1290_v44, %s1166_s11  ;;  %842 = vmatpush.bf16.msra.mxu0 %v1091_v33 }
  0x53   : > { %444 = vrot.lane.b32.xlu2 %v1292_v46, %s1166_s11  ;;  %1120 = vmatpush.bf16.msra.mxu2 %v1091_v33 }
  0x54   : > { %1119 = vmatpush.bf16.msra.mxu1 %v1091_v33  ;;  %1121 = vmatpush.bf16.msra.mxu3 %v1091_v33 }
  0x56   : > { %843 = vmatpush.bf16.msra.mxu0 %v1090_v34 }
  0x57   : > { %1123 = vmatpush.bf16.msra.mxu2 %v1090_v34 }
  0x58   : > { %1122 = vmatpush.bf16.msra.mxu1 %v1090_v34  ;;  %1124 = vmatpush.bf16.msra.mxu3 %v1090_v34 }
  0x59   : > { %393 = vrot.lane.b32.xlu1 %v374_v47, %s1167_s12 }
  0x5a   : > { %391 = vrot.lane.b32.xlu0 %v373_v48, %s1167_s12 }
  0x5b   : > { %536 = vrot.lane.b32.xlu2 %v373_v48, %s1169_s18 }
  0x61   : > { %583 = vrot.lane.b32.xlu1 %v421_v32, %s1170_s19 }
  0x62   : > { %495 = vrot.lane.b32.xlu0 %v1273_v37, %s1168_s17 }
  0x63   : > { %493 = vrot.lane.b32.xlu2 %v1282_v40, %s1168_s17 }
  0x69   : > { %442 = vrot.lane.b32.xlu1 %v423_v51, %s1166_s11 }
  0x6a   : > { %440 = vrot.lane.b32.xlu0 %v422_v52, %s1166_s11 }
  0x6b   : > { %585 = vrot.lane.b32.xlu2 %v422_v52, %s1170_s19 }
  0x71   : > { %633 = vrot.lane.b32.xlu1 %v470_v35, %s1171_s20 }
  0x72   : > { %544 = vrot.lane.b32.xlu0 %v523_v53, %s1169_s18 }
  0x73   : > { %542 = vrot.lane.b32.xlu2 %v1277_v38, %s1169_s18 }
  0x79   : > { %401 = vrot.lane.b32.xlu1 %v378_v55, %s1167_s12 }
  0x7a   : > { %399 = vrot.lane.b32.xlu0 %v523_v53, %s1167_s12 }
  0x7b   : > { %635 = vrot.lane.b32.xlu2 %v618_v50, %s1171_s20 }
  0x81   : > { %591 = vrot.lane.b32.xlu1 %v1290_v44, %s1170_s19 }
  0x82   : > { %491 = vrot.lane.b32.xlu0 %v1303_v49, %s1168_s17 }
  0x83   : > { %489 = vrot.lane.b32.xlu2 %v618_v50, %s1168_s17 }
  0x89   : > { %684 = vrot.lane.b32.xlu1 %v374_v47, %s1172_s22 }
  0x8a   : > { %682 = vrot.lane.b32.xlu0 %v373_v48, %s1172_s22 }
  0x8b   : > { %593 = vrot.lane.b32.xlu2 %v1329_v56, %s1170_s19 }
  0x91   : > { %538 = vrot.lane.b32.xlu1 %v374_v47, %s1169_s18 }
  0x92   : > { %450 = vrot.lane.b32.xlu0 %v427_v61, %s1166_s11 }
  0x93   : > { %448 = vrot.lane.b32.xlu2 %v1329_v56, %s1166_s11 }
  0x99   : > { %643 = vrot.lane.b32.xlu1 %v622_v54, %s1171_s20 }
  0x9a   : > { %641 = vrot.lane.b32.xlu0 %v1273_v37, %s1171_s20 }
  0x9b   : > { %540 = vrot.lane.b32.xlu2 %v1268_v36, %s1169_s18 }
  0x9d   : > { %v396_v63 = vpop.permute.xlu2 %395 }
  0x9e   : > { %416 = vst.msk [vmem:[#allocation3 + $0x20] sm:$0xff] %vm411_vm3, %v396_v63 }
  0xa1   : > { %497 = vrot.lane.b32.xlu1 %v622_v54, %s1168_s17  ;;  %v437_v1 = vpop.permute.xlu1 %436 }
  0xa2   : > { %733 = vrot.lane.b32.xlu0 %v423_v51, %s1173_s23  ;;  %v388_v0 = vpop.permute.xlu0 %387 }
  0xa3   : > { %731 = vrot.lane.b32.xlu2 %v422_v52, %s1173_s23  ;;  %412 = vst.msk [vmem:[#allocation3] sm:$0xff] %vm411_vm3, %v388_v0 }
  0xa4   : > { %461 = vst.msk [vmem:[#allocation3] sm:$0xff] %vm460_vm4, %v437_v1 }
  0xa5   : > { %v398_v2 = vpop.permute.xlu2 %397 }
  0xa6   : > { %417 = vst.msk [vmem:[#allocation3 + $0x28] sm:$0xff] %vm411_vm3, %v398_v2 }
  0xa9   : > { %589 = vrot.lane.b32.xlu1 %v1292_v46, %s1170_s19 }
  0xaa   : > { %587 = vrot.lane.b32.xlu0 %v423_v51, %s1170_s19 }
  0xab   : > { %499 = vrot.lane.b32.xlu2 %v476_v3, %s1168_s17 }
  0xad   : > { %v445_v4 = vpop.permute.xlu2 %444 }
  0xae   : > { %465 = vst.msk [vmem:[#allocation3 + $0x20] sm:$0xff] %vm460_vm4, %v445_v4 }
  0xb1   : > { %546 = vrot.lane.b32.xlu1 %v378_v55, %s1169_s18 }
  0xb2   : > { %692 = vrot.lane.b32.xlu0 %v378_v55, %s1172_s22 }
  0xb3   : > { %v439_v5 = vpop.permute.xlu1 %438  ;;  %690 = vrot.lane.b32.xlu2 %v523_v53, %s1172_s22 }
  0xb4   : > { %v390_v6 = vpop.permute.xlu0 %389 }
  0xb5   : > { %413 = vst.msk [vmem:[#allocation3 + $0x8] sm:$0xff] %vm411_vm3, %v390_v6  ;;  %v537_v7 = vpop.permute.xlu2 %536 }
  0xb6   : > { %462 = vst.msk [vmem:[#allocation3 + $0x8] sm:$0xff] %vm460_vm4, %v439_v5 }
  0xb9   : > { %639 = vrot.lane.b32.xlu1 %v1282_v40, %s1171_s20 }
  0xba   : > { %637 = vrot.lane.b32.xlu0 %v1303_v49, %s1171_s20 }
  0xbb   : > { %v488_v9 = vpop.permute.xlu1 %487  ;;  %548 = vrot.lane.b32.xlu2 %v525_v8, %s1169_s18 }
  0xbc   : > { %v486_v10 = vpop.permute.xlu0 %485  ;;  %511 = vst.msk [vmem:[#allocation3 + $0x8] sm:$0xff] %vm509_vm5, %v488_v9 }
  0xbd   : > { %510 = vst.msk [vmem:[#allocation3] sm:$0xff] %vm509_vm5, %v486_v10  ;;  %v494_v11 = vpop.permute.xlu2 %493 }
  0xbe   : > { %560 = vst.msk [vmem:[#allocation3 + $0x8] sm:$0xff] %vm558_vm6, %v537_v7 }
  0xbf   : > { %514 = vst.msk [vmem:[#allocation3 + $0x20] sm:$0xff] %vm509_vm5, %v494_v11 }
  0xc1   : > { %595 = vrot.lane.b32.xlu1 %v427_v61, %s1170_s19 }
  0xc2   : > { %741 = vrot.lane.b32.xlu0 %v427_v61, %s1173_s23 }
  0xc3   : > { %v535_v12 = vpop.permute.xlu1 %534  ;;  %739 = vrot.lane.b32.xlu2 %v1329_v56, %s1173_s23 }
  0xc4   : > { %v447_v13 = vpop.permute.xlu0 %446  ;;  %559 = vst.msk [vmem:[#allocation3] sm:$0xff] %vm558_vm6, %v535_v12 }
  0xc5   : > { %466 = vst.msk [vmem:[#allocation3 + $0x28] sm:$0xff] %vm460_vm4, %v447_v13  ;;  %v586_v14 = vpop.permute.xlu2 %585 }
  0xc6   : > { %609 = vst.msk [vmem:[#allocation3 + $0x8] sm:$0xff] %vm607_vm7, %v586_v14 }
  0xc9   : > { %688 = vrot.lane.b32.xlu1 %v1277_v38, %s1172_s22  ;;  %v1089_v38 = vld [vmem:[%s1513_s1 + $0x18] sm:$0xff] }
  0xca   : > { %686 = vrot.lane.b32.xlu0 %v1268_v36, %s1172_s22  ;;  %844 = vmatpush.bf16.msra.mxu0 %v1089_v38 }
  0xcb   : > { %v394_v16 = vpop.permute.xlu1 %393  ;;  %597 = vrot.lane.b32.xlu2 %v574_v15, %s1170_s19  ;;  %1126 = vmatpush.bf16.msra.mxu2 %v1089_v38 }
  0xcc   : > { %v392_v17 = vpop.permute.xlu0 %391  ;;  %415 = vst.msk [vmem:[#allocation3 + $0x18] sm:$0xff] %vm411_vm3, %v394_v16  ;;  %1125 = vmatpush.bf16.msra.mxu1 %v1089_v38  ;;  %1127 = vmatpush.bf16.msra.mxu3 %v1089_v38 }
  0xcd   : > { %414 = vst.msk [vmem:[#allocation3 + $0x10] sm:$0xff] %vm411_vm3, %v392_v17  ;;  %v543_v18 = vpop.permute.xlu2 %542 }
  0xce   : > { %563 = vst.msk [vmem:[#allocation3 + $0x20] sm:$0xff] %vm558_vm6, %v543_v18  ;;  %845 = vmatpush.bf16.msra.mxu0 %v1088_v39 }
  0xcf   : > { %1129 = vmatpush.bf16.msra.mxu2 %v1088_v39 }
  0xd0   : > { %1128 = vmatpush.bf16.msra.mxu1 %v1088_v39  ;;  %1130 = vmatpush.bf16.msra.mxu3 %v1088_v39 }
  0xd1   : > { %735 = vrot.lane.b32.xlu1 %v1292_v46, %s1173_s23 }
  0xd2   : > { %647 = vrot.lane.b32.xlu0 %v624_v19, %s1171_s20  ;;  %846 = vmatpush.bf16.msra.mxu0 %v1087_v43 }
  0xd3   : > { %v584_v20 = vpop.permute.xlu1 %583  ;;  %645 = vrot.lane.b32.xlu2 %v476_v3, %s1171_s20  ;;  %1132 = vmatpush.bf16.msra.mxu2 %v1087_v43 }
  0xd4   : > { %v496_v21 = vpop.permute.xlu0 %495  ;;  %608 = vst.msk [vmem:[#allocation3] sm:$0xff] %vm607_vm7, %v584_v20  ;;  %1131 = vmatpush.bf16.msra.mxu1 %v1087_v43  ;;  %1133 = vmatpush.bf16.msra.mxu3 %v1087_v43 }
  0xd5   : > { %515 = vst.msk [vmem:[#allocation3 + $0x28] sm:$0xff] %vm509_vm5, %v496_v21  ;;  %v636_v22 = vpop.permute.xlu2 %635 }
  0xd6   : > { %659 = vst.msk [vmem:[#allocation3 + $0x8] sm:$0xff] %vm657_vm8, %v636_v22 }
  0xd9   : > { %696 = vrot.lane.b32.xlu1 %v673_v23, %s1172_s22 }
  0xda   : > { %694 = vrot.lane.b32.xlu0 %v525_v8, %s1172_s22 }
  0xdb   : > { %v443_v24 = vpop.permute.xlu1 %442  ;;  %737 = vrot.lane.b32.xlu2 %v1290_v44, %s1173_s23  ;;  %v1086_v44 = vld [vmem:[%s1513_s1] sm:$0xff] }
  0xdc   : > { %v441_v25 = vpop.permute.xlu0 %440  ;;  %464 = vst.msk [vmem:[#allocation3 + $0x18] sm:$0xff] %vm460_vm4, %v443_v24  ;;  %847 = vmatpush.bf16.msra.mxu0 %v1086_v44  ;;  %1135 = vmatpush.bf16.msra.mxu2 %v1086_v44 }
  0xdd   : > { %463 = vst.msk [vmem:[#allocation3 + $0x10] sm:$0xff] %vm460_vm4, %v441_v25  ;;  %v490_v26 = vpop.permute.xlu2 %489  ;;  %1134 = vmatpush.bf16.msra.mxu1 %v1086_v44  ;;  %1136 = vmatpush.bf16.msra.mxu3 %v1086_v44  ;;  %v1156_v25 = vld [vmem:[%s1516_s4] ss:$0 sm:$0xff] }
  0xde   : > { %512 = vst.msk [vmem:[#allocation3 + $0x10] sm:$0xff] %vm509_vm5, %v490_v26 }
  0xe2   : > { %745 = vrot.lane.b32.xlu0 %v722_v28, %s1173_s23 }
  0xe3   : > { %v634_v30 = vpop.permute.xlu1 %633  ;;  %743 = vrot.lane.b32.xlu2 %v574_v15, %s1173_s23 }
  0xe4   : > { %v545_v31 = vpop.permute.xlu0 %544  ;;  %658 = vst.msk [vmem:[#allocation3] sm:$0xff] %vm657_vm8, %v634_v30 }
  0xe5   : > { %564 = vst.msk [vmem:[#allocation3 + $0x28] sm:$0xff] %vm558_vm6, %v545_v31  ;;  %v594_v32 = vpop.permute.xlu2 %593 }
  0xe6   : > { %613 = vst.msk [vmem:[#allocation3 + $0x28] sm:$0xff] %vm607_vm7, %v594_v32 }
  0xeb   : > { %v402_v35 = vpop.permute.xlu1 %401 }
  0xec   : > { %v400_v36 = vpop.permute.xlu0 %399  ;;  %419 = vst.msk [vmem:[#allocation3 + $0x38] sm:$0xff] %vm411_vm3, %v402_v35 }
  0xed   : > { %418 = vst.msk [vmem:[#allocation3 + $0x30] sm:$0xff] %vm411_vm3, %v400_v36  ;;  %v449_v37 = vpop.permute.xlu2 %448 }
  0xee   : > { %467 = vst.msk [vmem:[#allocation3 + $0x30] sm:$0xff] %vm460_vm4, %v449_v37 }
  0xf3   : > { %v592_v40 = vpop.permute.xlu1 %591 }
  0xf4   : > { %v492_v41 = vpop.permute.xlu0 %491  ;;  %612 = vst.msk [vmem:[#allocation3 + $0x20] sm:$0xff] %vm607_vm7, %v592_v40 }
  0xf5   : > { %513 = vst.msk [vmem:[#allocation3 + $0x18] sm:$0xff] %vm509_vm5, %v492_v41  ;;  %v541_v42 = vpop.permute.xlu2 %540 }
  0xf6   : > { %562 = vst.msk [vmem:[#allocation3 + $0x18] sm:$0xff] %vm558_vm6, %v541_v42 }
  0xfb   : > { %v685_v45 = vpop.permute.xlu1 %684 }
  0xfc   : > { %v683_v46 = vpop.permute.xlu0 %682  ;;  %708 = vst.msk [vmem:[#allocation3 + $0x8] sm:$0xff] %vm706_vm9, %v685_v45 }
  0xfd   : > { %707 = vst.msk [vmem:[#allocation3] sm:$0xff] %vm706_vm9, %v683_v46  ;;  %v732_v47 = vpop.permute.xlu2 %731 }
  0xfe   : > { %756 = vst.msk [vmem:[#allocation3] sm:$0xff] %vm755_vm10, %v732_v47 }
 0x103   : > { %v539_v48 = vpop.permute.xlu1 %538 }
 0x104   : > { %v451_v49 = vpop.permute.xlu0 %450  ;;  %561 = vst.msk [vmem:[#allocation3 + $0x10] sm:$0xff] %vm558_vm6, %v539_v48 }
 0x105   : > { %468 = vst.msk [vmem:[#allocation3 + $0x38] sm:$0xff] %vm460_vm4, %v451_v49  ;;  %v500_v50 = vpop.permute.xlu2 %499  ;;  %v764_v57 = vld [vmem:[#allocation3] sm:$0xff] }
 0x106   : > { %517 = vst.msk [vmem:[#allocation3 + $0x38] sm:$0xff] %vm509_vm5, %v500_v50 }
 0x10b   : > { %v644_v51 = vpop.permute.xlu1 %643 }
 0x10c   : > { %v642_v52 = vpop.permute.xlu0 %641  ;;  %663 = vst.msk [vmem:[#allocation3 + $0x28] sm:$0xff] %vm657_vm8, %v644_v51 }
 0x10d   : > { %662 = vst.msk [vmem:[#allocation3 + $0x20] sm:$0xff] %vm657_vm8, %v642_v52  ;;  %v691_v53 = vpop.permute.xlu2 %690 }
 0x10e   : > { %711 = vst.msk [vmem:[#allocation3 + $0x20] sm:$0xff] %vm706_vm9, %v691_v53 }
 0x113   : > { %v498_v54 = vpop.permute.xlu1 %497 }
 0x114   : > { %v734_v55 = vpop.permute.xlu0 %733  ;;  %516 = vst.msk [vmem:[#allocation3 + $0x30] sm:$0xff] %vm509_vm5, %v498_v54 }
 0x115   : > { %757 = vst.msk [vmem:[#allocation3 + $0x8] sm:$0xff] %vm755_vm10, %v734_v55  ;;  %v549_v56 = vpop.permute.xlu2 %548 }
 0x116   : > { %566 = vst.msk [vmem:[#allocation3 + $0x38] sm:$0xff] %vm558_vm6, %v549_v56 }
 0x11b   : > { %v590_v58 = vpop.permute.xlu1 %589 }
 0x11c   : > { %v588_v59 = vpop.permute.xlu0 %587  ;;  %611 = vst.msk [vmem:[#allocation3 + $0x18] sm:$0xff] %vm607_vm7, %v590_v58  ;;  %v765_v60 = vld [vmem:[#allocation3 + $0x8] sm:$0xff] }
 0x11d   : > { %610 = vst.msk [vmem:[#allocation3 + $0x10] sm:$0xff] %vm607_vm7, %v588_v59  ;;  %v772_v61 = vpack.c.bf16 %v765_v60, %v764_v57  ;;  %v740_v62 = vpop.permute.xlu2 %739 }
 0x11e   : > { %760 = vst.msk [vmem:[#allocation3 + $0x20] sm:$0xff] %vm755_vm10, %v740_v62 }
 0x11f   : > { %848 = vmatmul.bf16.vlgmr.msra.gmra.mxu0 %v772_v61 }
 0x123   : > { %v547_v63 = vpop.permute.xlu1 %546 }
 0x124   : > { %v693_v0 = vpop.permute.xlu0 %692  ;;  %565 = vst.msk [vmem:[#allocation3 + $0x30] sm:$0xff] %vm558_vm6, %v547_v63 }
 0x125   : > { %712 = vst.msk [vmem:[#allocation3 + $0x28] sm:$0xff] %vm706_vm9, %v693_v0  ;;  %v598_v1 = vpop.permute.xlu2 %597  ;;  %v768_v7 = vld [vmem:[#allocation3 + $0x20] sm:$0xff] }
 0x126   : > { %615 = vst.msk [vmem:[#allocation3 + $0x38] sm:$0xff] %vm607_vm7, %v598_v1 }
 0x12b   : > { %v640_v2 = vpop.permute.xlu1 %639 }
 0x12c   : > { %v638_v3 = vpop.permute.xlu0 %637  ;;  %661 = vst.msk [vmem:[#allocation3 + $0x18] sm:$0xff] %vm657_vm8, %v640_v2 }
 0x12d   : > { %660 = vst.msk [vmem:[#allocation3 + $0x10] sm:$0xff] %vm657_vm8, %v638_v3  ;;  %v646_v4 = vpop.permute.xlu2 %645 }
 0x133   : > { %v596_v5 = vpop.permute.xlu1 %595 }
 0x134   : > { %v742_v6 = vpop.permute.xlu0 %741  ;;  %614 = vst.msk [vmem:[#allocation3 + $0x30] sm:$0xff] %vm607_vm7, %v596_v5 }
 0x135   : > { %761 = vst.msk [vmem:[#allocation3 + $0x28] sm:$0xff] %vm755_vm10, %v742_v6  ;;  %v738_v8 = vpop.permute.xlu2 %737 }
 0x136   : > { %664 = vst.msk [vmem:[#allocation3 + $0x30] sm:$0xff] %vm657_vm8, %v646_v4 }
 0x13b   : > { %v689_v9 = vpop.permute.xlu1 %688 }
 0x13c   : > { %v687_v10 = vpop.permute.xlu0 %686  ;;  %710 = vst.msk [vmem:[#allocation3 + $0x18] sm:$0xff] %vm706_vm9, %v689_v9  ;;  %v769_v11 = vld [vmem:[#allocation3 + $0x28] sm:$0xff] }
 0x13d   : > { %709 = vst.msk [vmem:[#allocation3 + $0x10] sm:$0xff] %vm706_vm9, %v687_v10  ;;  %v774_v12 = vpack.c.bf16 %v769_v11, %v768_v7  ;;  %v744_v16 = vpop.permute.xlu2 %743 }
 0x13e   : > { %759 = vst.msk [vmem:[#allocation3 + $0x18] sm:$0xff] %vm755_vm10, %v738_v8 }
 0x13f   : > { %858 = vmatmul.bf16.vlgmr.msra.gmra.mxu2 %v774_v12 }
 0x143   : > { %v736_v13 = vpop.permute.xlu1 %735 }
 0x144   : > { %v648_v14 = vpop.permute.xlu0 %647  ;;  %758 = vst.msk [vmem:[#allocation3 + $0x10] sm:$0xff] %vm755_vm10, %v736_v13 }
 0x145   : > { %665 = vst.msk [vmem:[#allocation3 + $0x38] sm:$0xff] %vm657_vm8, %v648_v14  ;;  %v767_v15 = vld [vmem:[#allocation3 + $0x18] sm:$0xff] }
 0x14b   : > { %v766_v18 = vld [vmem:[#allocation3 + $0x10] sm:$0xff]  ;;  %v697_v19 = vpop.permute.xlu1 %696 }
 0x14c   : > { %v695_v17 = vpop.permute.xlu0 %694  ;;  %v773_v20 = vpack.c.bf16 %v767_v15, %v766_v18  ;;  %714 = vst.msk [vmem:[#allocation3 + $0x38] sm:$0xff] %vm706_vm9, %v697_v19 }
 0x14d   : > { %713 = vst.msk [vmem:[#allocation3 + $0x30] sm:$0xff] %vm706_vm9, %v695_v17 }
 0x14e   : > { %853 = vmatmul.bf16.vlgmr.msra.gmra.mxu1 %v773_v20  ;;  %762 = vst.msk [vmem:[#allocation3 + $0x30] sm:$0xff] %vm755_vm10, %v744_v16 }
 0x154   : > { %v746_v21 = vpop.permute.xlu0 %745 }
 0x155   : > { %763 = vst.msk [vmem:[#allocation3 + $0x38] sm:$0xff] %vm755_vm10, %v746_v21  ;;  %v770_v22 = vld [vmem:[#allocation3 + $0x30] sm:$0xff] }
 0x15c   : > { %v771_v23 = vld [vmem:[#allocation3 + $0x38] sm:$0xff] }
 0x15d   : > { %v775_v24 = vpack.c.bf16 %v771_v23, %v770_v22 }
 0x15f   : > { %863 = vmatmul.bf16.vlgmr.msra.gmra.mxu3 %v775_v24 }
 0x19c   : > { %v849_v26 = vpop.f32.mrf.mxu0 }
 0x19d   : > { %v873_v27 = vadd.f32 %v1156_v25, %v849_v26 }
 0x19f   : > { %v881_v28 = vpack.c.bf16 %v873_v27, %v873_v27  ;;  %v920_v45 = vmul.f32 %v873_v27, %v873_v27  ;;  %v898_v48 = vsel %vm346_vm2, %v873_v27, 0.0 }
 0x1a1   : > { %890 = vst.msk [vmem:[%s1225_s7] sm:$0xf] %vm889_vm11, %v881_v28  ;;  %v928_v53 = vsel %vm346_vm2, %v920_v45, 0.0 }
 0x1a4   : > { %v851_v29 = vpop.f32.mrf.mxu0 }
 0x1a5   : > { %v874_v30 = vadd.f32 %v1156_v25, %v851_v29 }
 0x1a7   : > { %v882_v31 = vpack.c.bf16 %v874_v30, %v874_v30  ;;  %v921_v44 = vmul.f32 %v874_v30, %v874_v30  ;;  %v899_v46 = vsel %vm346_vm2, %v874_v30, 0.0 }
 0x1a8   : > { %v900_v52 = vadd.f32 %v899_v46, %v898_v48 }
 0x1a9   : > { %891 = vst.msk [vmem:[%s1225_s7 + $0x4] sm:$0xf] %vm889_vm11, %v882_v31  ;;  %v929_v49 = vsel %vm346_vm2, %v921_v44, 0.0 }
 0x1aa   : > { %v930_v56 = vadd.f32 %v929_v49, %v928_v53 }
 0x1c2   : > { %v859_v32 = vpop.f32.mrf.mxu2 }
 0x1c3   : > { %v877_v33 = vadd.f32 %v1156_v25, %v859_v32 }
 0x1c5   : > { %v885_v34 = vpack.c.bf16 %v877_v33, %v877_v33  ;;  %v924_v62 = vmul.f32 %v877_v33, %v877_v33  ;;  %v905_v1 = vsel %vm346_vm2, %v877_v33, 0.0 }
 0x1c7   : > { %894 = vst.msk [vmem:[%s1225_s7 + $0x10] sm:$0xf] %vm889_vm11, %v885_v34  ;;  %v935_v4 = vsel %vm346_vm2, %v924_v62, 0.0 }
 0x1ca   : > { %v861_v35 = vpop.f32.mrf.mxu2 }
 0x1cb   : > { %v878_v36 = vadd.f32 %v1156_v25, %v861_v35  ;;  %v854_v37 = vpop.f32.mrf.mxu1 }
 0x1cc   : > { %v875_v38 = vadd.f32 %v1156_v25, %v854_v37 }
 0x1cd   : > { %v886_v39 = vpack.c.bf16 %v878_v36, %v878_v36  ;;  %v925_v5 = vmul.f32 %v878_v36, %v878_v36  ;;  %v907_v8 = vsel %vm346_vm2, %v878_v36, 0.0 }
 0x1ce   : > { %v883_v40 = vpack.c.bf16 %v875_v38, %v875_v38  ;;  %v922_v47 = vmul.f32 %v875_v38, %v875_v38  ;;  %v901_v50 = vsel %vm346_vm2, %v875_v38, 0.0 }
 0x1cf   : > { %895 = vst.msk [vmem:[%s1225_s7 + $0x14] sm:$0xf] %vm889_vm11, %v886_v39  ;;  %v902_v57 = vadd.f32 %v901_v50, %v900_v52  ;;  %v937_v12 = vsel %vm346_vm2, %v925_v5, 0.0 }
 0x1d0   : > { %892 = vst.msk [vmem:[%s1225_s7 + $0x8] sm:$0xf] %vm889_vm11, %v883_v40  ;;  %v931_v54 = vsel %vm346_vm2, %v922_v47, 0.0 }
 0x1d1   : > { %v932_v59 = vadd.f32 %v931_v54, %v930_v56 }
 0x1d3   : > { %v856_v41 = vpop.f32.mrf.mxu1 }
 0x1d4   : > { %v876_v42 = vadd.f32 %v1156_v25, %v856_v41 }
 0x1d6   : > { %v884_v43 = vpack.c.bf16 %v876_v42, %v876_v42  ;;  %v923_v51 = vmul.f32 %v876_v42, %v876_v42  ;;  %v903_v55 = vsel %vm346_vm2, %v876_v42, 0.0 }
 0x1d7   : > { %v904_v60 = vadd.f32 %v903_v55, %v902_v57 }
 0x1d8   : > { %893 = vst.msk [vmem:[%s1225_s7 + $0xc] sm:$0xf] %vm889_vm11, %v884_v43  ;;  %v933_v58 = vsel %vm346_vm2, %v923_v51, 0.0 }
 0x1d9   : > { %v934_v0 = vadd.f32 %v933_v58, %v932_v59  ;;  %v906_v3 = vadd.f32 %v905_v1, %v904_v60 }
 0x1db   : > { %v936_v7 = vadd.f32 %v935_v4, %v934_v0  ;;  %v908_v10 = vadd.f32 %v907_v8, %v906_v3 }
 0x1dd   : > { %v938_v16 = vadd.f32 %v937_v12, %v936_v7 }
 0x1e2   : > { %v864_v61 = vpop.f32.mrf.mxu3 }
 0x1e3   : > { %v879_v63 = vadd.f32 %v1156_v25, %v864_v61 }
 0x1e5   : > { %v887_v2 = vpack.c.bf16 %v879_v63, %v879_v63  ;;  %v926_v6 = vmul.f32 %v879_v63, %v879_v63  ;;  %v909_v9 = vsel %vm346_vm2, %v879_v63, 0.0 }
 0x1e6   : > { %v910_v15 = vadd.f32 %v909_v9, %v908_v10 }
 0x1e7   : > { %896 = vst.msk [vmem:[%s1225_s7 + $0x18] sm:$0xf] %vm889_vm11, %v887_v2  ;;  %v939_v13 = vsel %vm346_vm2, %v926_v6, 0.0 }
 0x1e8   : > { %v940_v20 = vadd.f32 %v939_v13, %v938_v16 }
 0x1ea   : > { %v866_v11 = vpop.f32.mrf.mxu3 }
 0x1eb   : > { %v880_v14 = vadd.f32 %v1156_v25, %v866_v11 }
 0x1ed   : > { %v888_v17 = vpack.c.bf16 %v880_v14, %v880_v14  ;;  %v911_v18 = vsel %vm346_vm2, %v880_v14, 0.0  ;;  %v927_v19 = vmul.f32 %v880_v14, %v880_v14 }
 0x1ee   : > { %v912_v21 = vadd.f32 %v911_v18, %v910_v15 }
 0x1ef   : > { %897 = vst.msk [vmem:[%s1225_s7 + $0x1c] sm:$0xf] %vm889_vm11, %v888_v17  ;;  %v941_v22 = vsel %vm346_vm2, %v927_v19, 0.0 }
 0x1f0   : > { %v913_v23 = vsel %vm346_vm2, %v912_v21, 0.0  ;;  %v942_v24 = vadd.f32 %v941_v22, %v940_v20 }
 0x1f1   : > { %v914_v26 = vrot.slane %v913_v23, 4 }
 0x1f2   : > { %v943_v25 = vsel %vm346_vm2, %v942_v24, 0.0 }
 0x1f3   : > { %v915_v27 = vadd.f32 %v914_v26, %v913_v23  ;;  %v944_v28 = vrot.slane %v943_v25, 4 }
 0x1f5   : > { %v916_v29 = vrot.slane %v915_v27, 2  ;;  %v945_v30 = vadd.f32 %v944_v28, %v943_v25 }
 0x1f7   : > { %v917_v31 = vadd.f32 %v916_v29, %v915_v27  ;;  %v946_v32 = vrot.slane %v945_v30, 2 }
 0x1f9   : > { %v918_v33 = vrot.slane %v917_v31, 1  ;;  %v947_v34 = vadd.f32 %v946_v32, %v945_v30 }
 0x1fb   : > { %v919_v35 = vadd.f32 %v918_v33, %v917_v31  ;;  %v948_v36 = vrot.slane %v947_v34, 1 }
 0x1fd   : > { %v949_v37 = vadd.f32 %v948_v36, %v947_v34  ;;  %951 = vst.msk [vmem:[%s1230_s10] sm:$0x1] %vm950_vm12, %v919_v35 }
 0x1ff   : > { %952 = vst.msk [vmem:[%s1230_s10 + $0x1] sm:$0x1] %vm950_vm12, %v949_v37 }
 0x200 PF: > { %s17_s21 = sadd.s32 1, %s1163_s21  }
 0x201   : > { %p14_p5 = scmp.ge.s32.totalorder %s17_s21, 4  }
 0x203   :  { %16 = sbr.rel (!%p14_p5) target bundleno = 1 (0x1), region = 88 }

</bundles_post_ra>
